<compile_context>
chip_gen: v7x
topology: tpu7x:2x2x1
jax: 0.10.0
libtpu: 0.0.40
codegen_flags: <defaults>
</compile_context>

<pallas_src>
import functools

import jax
import jax.numpy as jnp
from jax import lax
from jax.experimental import pallas as pl
from jax.experimental.pallas import tpu as pltpu

EPS_BN = 1e-5
EPS_LN = 1e-5
MAX_ROW_TILE = 256  # feeds v6e/v7x 256x256 MXU; all Ms here are <= 198 -> single block


# --------------------------------------------------------------------------
# Row tiling helper: no padding for the (common) small-M case
# --------------------------------------------------------------------------
def _row_tiling(M, max_tile=MAX_ROW_TILE):
    if M <= max_tile:
        return M, 1, M               # tile, n_blocks, padded_M  (no padding)
    Mp = pl.cdiv(M, max_tile) * max_tile
    return max_tile, Mp // max_tile, Mp


def _maybe_pad_rows(x, Mp):
    M = x.shape[0]
    if Mp == M:
        return x
    return jnp.pad(x, ((0, Mp - M),) + ((0, 0),) * (x.ndim - 1))


def _elu(y):
    return jnp.where(y > 0, y, jnp.exp(jnp.minimum(y, 0.0)) - 1.0)


def _layernorm(x, g, b):
    mean = jnp.mean(x, axis=-1, keepdims=True)
    var = jnp.mean(jnp.square(x - mean), axis=-1, keepdims=True)
    return (x - mean) * lax.rsqrt(var + EPS_LN) * g + b


# --------------------------------------------------------------------------
# Pallas kernels
# --------------------------------------------------------------------------
def _matmul_affine_kernel(a_ref, b_ref, scale_ref, shift_ref, o_ref, *, activation):
    """o = act((a @ b) * scale + shift); a,b are bf16, accumulate in f32."""
    acc = jnp.dot(a_ref[...], b_ref[...], preferred_element_type=jnp.float32)
    y = acc * scale_ref[...] + shift_ref[...]
    if activation == "elu":
        y = _elu(y)
    elif activation == "relu":
        y = jnp.maximum(y, 0.0)
    o_ref[...] = y


def _attention_kernel(q_ref, k_ref, v_ref, o_ref, *, scale):
    """Single program over all (BH, S, Dh): batched softmax attention."""
    q = q_ref[...]
    k = k_ref[...]
    v = v_ref[...]
    s = jnp.einsum("bqd,bkd->bqk", q, k,
                   preferred_element_type=jnp.float32) * scale
    m = jnp.max(s, axis=-1, keepdims=True)
    p = jnp.exp(s - m)
    denom = jnp.sum(p, axis=-1, keepdims=True)
    p = p * pl.reciprocal(denom, approx=True)
    o_ref[...] = jnp.einsum("bqk,bkd->bqd", p.astype(v.dtype), v,
                            preferred_element_type=jnp.float32)


def _proj_add_ln_kernel(o_ref, w_ref, b_ref, res_ref, g_ref, beta_ref, y_ref):
    """y = LayerNorm((o @ w + b) + res) — attention out-proj fused with
    residual add and LN1."""
    proj = jnp.dot(o_ref[...], w_ref[...],
                   preferred_element_type=jnp.float32) + b_ref[...]
    x = proj + res_ref[...]
    y_ref[...] = _layernorm(x, g_ref[...], beta_ref[...])


def _ffn_add_ln_kernel(x_ref, w1_ref, b1_ref, w2_ref, b2_ref, g_ref, beta_ref,
                       y_ref):
    """y = LayerNorm(x + W2 @ relu(W1 @ x + b1) + b2) — whole FFN + residual +
    LN2 in one kernel; the hidden h stays on-chip."""
    x = x_ref[...]                                              # f32 residual
    h = jnp.dot(x.astype(jnp.bfloat16), w1_ref[...],
                preferred_element_type=jnp.float32) + b1_ref[...]
    h = jnp.maximum(h, 0.0)
    ff = jnp.dot(h.astype(jnp.bfloat16), w2_ref[...],
                 preferred_element_type=jnp.float32) + b2_ref[...]
    z = x + ff
    y_ref[...] = _layernorm(z, g_ref[...], beta_ref[...])


# --------------------------------------------------------------------------
# Wrappers
# --------------------------------------------------------------------------
def matmul_affine(a, b, scale, shift, activation="none"):
    """y = act((a @ b) * scale + shift); a:(M,K), b:(K,N), scale/shift:(N,)."""
    M, K = a.shape
    K2, N = b.shape
    assert K == K2
    tm, nblk, Mp = _row_tiling(M)
    a_bf = _maybe_pad_rows(a.astype(jnp.bfloat16), Mp)
    kern = functools.partial(_matmul_affine_kernel, activation=activation)
    out = pl.pallas_call(
        kern,
        out_shape=jax.ShapeDtypeStruct((Mp, N), jnp.float32),
        grid=(nblk,),
        in_specs=[
            pl.BlockSpec((tm, K), lambda i: (i, 0)),
            pl.BlockSpec((K, N), lambda i: (0, 0)),
            pl.BlockSpec((1, N), lambda i: (0, 0)),
            pl.BlockSpec((1, N), lambda i: (0, 0)),
        ],
        out_specs=pl.BlockSpec((tm, N), lambda i: (i, 0)),
        compiler_params=pltpu.CompilerParams(dimension_semantics=("parallel",)),
    )(a_bf, b.astype(jnp.bfloat16),
      scale.reshape(1, N).astype(jnp.float32),
      shift.reshape(1, N).astype(jnp.float32))
    return out[:M] if Mp != M else out


def attention(q, k, v):
    """q,k,v: (BH, S, Dh) -> (BH, S, Dh). One program for all batch*heads."""
    BH, S, Dh = q.shape
    kern = functools.partial(_attention_kernel, scale=1.0 / (Dh ** 0.5))
    return pl.pallas_call(
        kern,
        out_shape=jax.ShapeDtypeStruct((BH, S, Dh), jnp.float32),
        grid=(1,),
        in_specs=[
            pl.BlockSpec((BH, S, Dh), lambda i: (0, 0, 0)),
            pl.BlockSpec((BH, S, Dh), lambda i: (0, 0, 0)),
            pl.BlockSpec((BH, S, Dh), lambda i: (0, 0, 0)),
        ],
        out_specs=pl.BlockSpec((BH, S, Dh), lambda i: (0, 0, 0)),
        compiler_params=pltpu.CompilerParams(dimension_semantics=("arbitrary",)),
    )(q.astype(jnp.bfloat16), k.astype(jnp.bfloat16), v.astype(jnp.bfloat16))


def proj_add_layernorm(o, w, b, res, gamma, beta):
    """LayerNorm(o @ w + b + res); o,res:(M,E), w:(E,E)."""
    M, E = o.shape
    tm, nblk, Mp = _row_tiling(M)
    o_bf = _maybe_pad_rows(o.astype(jnp.bfloat16), Mp)
    res_p = _maybe_pad_rows(res.astype(jnp.float32), Mp)
    out = pl.pallas_call(
        _proj_add_ln_kernel,
        out_shape=jax.ShapeDtypeStruct((Mp, E), jnp.float32),
        grid=(nblk,),
        in_specs=[
            pl.BlockSpec((tm, E), lambda i: (i, 0)),
            pl.BlockSpec((E, E), lambda i: (0, 0)),
            pl.BlockSpec((1, E), lambda i: (0, 0)),
            pl.BlockSpec((tm, E), lambda i: (i, 0)),
            pl.BlockSpec((1, E), lambda i: (0, 0)),
            pl.BlockSpec((1, E), lambda i: (0, 0)),
        ],
        out_specs=pl.BlockSpec((tm, E), lambda i: (i, 0)),
        compiler_params=pltpu.CompilerParams(dimension_semantics=("parallel",)),
    )(o_bf, w.astype(jnp.bfloat16), b.reshape(1, E).astype(jnp.float32),
      res_p, gamma.reshape(1, E).astype(jnp.float32),
      beta.reshape(1, E).astype(jnp.float32))
    return out[:M] if Mp != M else out


def ffn_add_layernorm(x, w1, b1, w2, b2, gamma, beta):
    """LayerNorm(x + relu(x @ w1 + b1) @ w2 + b2); x:(M,E)."""
    M, E = x.shape
    FF = w1.shape[1]
    tm, nblk, Mp = _row_tiling(M)
    x_p = _maybe_pad_rows(x.astype(jnp.float32), Mp)
    out = pl.pallas_call(
        _ffn_add_ln_kernel,
        out_shape=jax.ShapeDtypeStruct((Mp, E), jnp.float32),
        grid=(nblk,),
        in_specs=[
            pl.BlockSpec((tm, E), lambda i: (i, 0)),
            pl.BlockSpec((E, FF), lambda i: (0, 0)),
            pl.BlockSpec((1, FF), lambda i: (0, 0)),
            pl.BlockSpec((FF, E), lambda i: (0, 0)),
            pl.BlockSpec((1, E), lambda i: (0, 0)),
            pl.BlockSpec((1, E), lambda i: (0, 0)),
            pl.BlockSpec((1, E), lambda i: (0, 0)),
        ],
        out_specs=pl.BlockSpec((tm, E), lambda i: (i, 0)),
        compiler_params=pltpu.CompilerParams(dimension_semantics=("parallel",)),
    )(x_p, w1.astype(jnp.bfloat16), b1.reshape(1, FF).astype(jnp.float32),
      w2.astype(jnp.bfloat16), b2.reshape(1, E).astype(jnp.float32),
      gamma.reshape(1, E).astype(jnp.float32),
      beta.reshape(1, E).astype(jnp.float32))
    return out[:M] if Mp != M else out


# --------------------------------------------------------------------------
# Glue: im2col, transformer layer, full forward
# --------------------------------------------------------------------------
def im2col_1d(x, k, stride, pad):
    """x: (N, L, C) -> (N, Lout, k*C) (PyTorch Conv1d window extraction)."""
    N, L, C = x.shape
    xpad = jnp.pad(x, ((0, 0), (pad, pad), (0, 0)))
    Lp = L + 2 * pad
    Lout = (Lp - k) // stride + 1
    cols = [xpad[:, j: j + stride * (Lout - 1) + 1: stride, :] for j in range(k)]
    patches = jnp.stack(cols, axis=2)  # (N, Lout, k, C)
    return patches.reshape(N, Lout, k * C), Lout


def transformer_encoder_layer(x, p, num_heads):
    """Post-norm TransformerEncoderLayer (eval: dropout = identity). x: (N,S,E)."""
    N, S, E = x.shape
    Dh = E // num_heads
    xf = x.reshape(N * S, E)

    ones3 = jnp.ones((3 * E,), jnp.float32)
    qkv = matmul_affine(xf, p["w_in"], ones3, p["b_in"], "none")    # (N*S, 3E)
    q, k, v = jnp.split(qkv, 3, axis=-1)

    def to_heads(t):
        return (t.reshape(N, S, num_heads, Dh)
                 .transpose(0, 2, 1, 3)
                 .reshape(N * num_heads, S, Dh))

    o = attention(to_heads(q), to_heads(k), to_heads(v))            # (N*H, S, Dh)
    o = (o.reshape(N, num_heads, S, Dh)
          .transpose(0, 2, 1, 3)
          .reshape(N * S, E))

    x1 = proj_add_layernorm(o, p["w_out"], p["b_out"], xf, p["ln1_g"], p["ln1_b"])
    x2 = ffn_add_layernorm(x1, p["w_ff1"], p["b_ff1"], p["w_ff2"], p["b_ff2"],
                           p["ln2_g"], p["ln2_b"])
    return x2.reshape(N, S, E)


def conv_transformer_encoder_forward(x_ncl, params):
    """x_ncl: (N, 1, L) PyTorch NCL.  Returns (N, 512, L_out)."""
    x = jnp.transpose(x_ncl, (0, 2, 1))  # -> (N, L, 1) channels-last
    N = x.shape[0]

    # conv stack: Conv1d -> BatchNorm1d(eval) -> ELU, fused in one Pallas matmul
    for cp in params["convs"]:
        patches, Lout = im2col_1d(x, cp["k"], cp["s"], cp["p"])
        scale = cp["gamma"] / jnp.sqrt(cp["var"] + EPS_BN)
        shift = cp["beta"] - cp["mean"] * scale + cp["b"] * scale
        y = matmul_affine(patches.reshape(N * Lout, -1), cp["w"], scale, shift, "elu")
        x = y.reshape(N, Lout, -1)

    # Fold the final eval-mode BatchNorm1d affine into the last layer's LN2:
    #   BN(LN(x)) = norm(x) * (g * s) + (b * s + t)
    bp = params["bn_t"]
    bn_scale = bp["gamma"] / jnp.sqrt(bp["var"] + EPS_BN)
    bn_shift = bp["beta"] - bp["mean"] * bn_scale

    n_layers = len(params["layers"])
    for li, lp in enumerate(params["layers"]):
        if li == n_layers - 1:
            lp = dict(lp)
            lp["ln2_g"] = lp["ln2_g"] * bn_scale
            lp["ln2_b"] = lp["ln2_b"] * bn_scale + bn_shift
        x = transformer_encoder_layer(x, lp, num_heads=8)

    return jnp.transpose(x, (0, 2, 1))  # (N, 512, S)


# --------------------------------------------------------------------------
# Deterministic parameter construction (synthetic; eval-mode BN running stats)
# NOTE: im2col weights are stored k-major as (k*Cin, Cout); loading real
# PyTorch Conv1d weights (Cout, Cin, k) requires permuting to (k, Cin, Cout).
# --------------------------------------------------------------------------
def init_params(key):
    keys = iter(jax.random.split(key, 256))

    def nrm(shape, scl):
        return jax.random.normal(next(keys), shape, jnp.float32) * scl

    params = {"convs": [], "layers": []}

    conv_cfgs = [(1, 512, 10, 5, 2)] + [(512, 512, 3, 2, 1)] * 5
    for (cin, cout, k, s, pd) in conv_cfgs:
        params["convs"].append(dict(
            w=nrm((k * cin, cout), 0.05),
            b=nrm((cout,), 0.05),
            gamma=1.0 + nrm((cout,), 0.05),
            beta=nrm((cout,), 0.05),
            mean=nrm((cout,), 0.05),
            var=jnp.abs(nrm((cout,), 0.05)) + 1.0,
            k=k, s=s, p=pd,
        ))

    E, FF = 512, 512
    for _ in range(3):
        params["layers"].append(dict(
            w_in=nrm((E, 3 * E), 0.03), b_in=nrm((3 * E,), 0.03),
            w_out=nrm((E, E), 0.03), b_out=nrm((E,), 0.03),
            ln1_g=1.0 + nrm((E,), 0.05), ln1_b=nrm((E,), 0.05),
            w_ff1=nrm((E, FF), 0.03), b_ff1=nrm((FF,), 0.03),
            w_ff2=nrm((FF, E), 0.03), b_ff2=nrm((E,), 0.03),
            ln2_g=1.0 + nrm((E,), 0.05), ln2_b=nrm((E,), 0.05),
        ))

    params["bn_t"] = dict(
        gamma=1.0 + nrm((E,), 0.05), beta=nrm((E,), 0.05),
        mean=nrm((E,), 0.05), var=jnp.abs(nrm((E,), 0.05)) + 1.0,
    )
    return params


if __name__ == "__main__":
    key = jax.random.PRNGKey(0)
    kx, kp = jax.random.split(key)

    N, L = 2, 500                       # (N, 1, 500) -> conv stack -> seq len 4
    x = jax.random.normal(kx, (N, 1, L), jnp.float32)
    params = init_params(kp)

    out = conv_transformer_encoder_forward(x, params)
    out = jax.block_until_ready(out)

    assert out.shape == (N, 512, 4), out.shape
    assert bool(jnp.all(jnp.isfinite(out)))
    print("KERNEL_OK")
</pallas_src>

<mosaic_0001>
module attributes {stable_mosaic.version = 11 : i64} {
  func.func @_matmul_affine_kernel(%arg0: i32, %arg1: memref<198x10xbf16, #tpu.memory_space<vmem>>, %arg2: memref<10x512xbf16, #tpu.memory_space<vmem>>, %arg3: memref<1x512xf32, #tpu.memory_space<vmem>>, %arg4: memref<1x512xf32, #tpu.memory_space<vmem>>, %arg5: memref<198x512xf32, #tpu.memory_space<vmem>>) attributes {dimension_semantics = [#tpu.dimension_semantics<parallel>], iteration_bounds = array<i64: 1>, scalar_prefetch = 0 : i64, scratch_operands = 0 : i64, tpu.core_type = #tpu.core_type<tc>, window_params = [{transform_indices = @transform_0, window_bounds = array<i64: 198, 10>}, {pipeline_mode = #tpu.pipeline_mode<synchronous>, transform_indices = @transform_1, window_bounds = array<i64: 10, 512>}, {pipeline_mode = #tpu.pipeline_mode<synchronous>, transform_indices = @transform_2, window_bounds = array<i64: 1, 512>}, {pipeline_mode = #tpu.pipeline_mode<synchronous>, transform_indices = @transform_3, window_bounds = array<i64: 1, 512>}, {transform_indices = @transform_4, window_bounds = array<i64: 198, 512>}]} {
    %c0 = arith.constant 0 : index
    %c0_0 = arith.constant 0 : index
    %0 = vector.load %arg1[%c0, %c0_0] : memref<198x10xbf16, #tpu.memory_space<vmem>>, vector<198x10xbf16>
    %c0_1 = arith.constant 0 : index
    %c0_2 = arith.constant 0 : index
    %1 = vector.load %arg2[%c0_1, %c0_2] : memref<10x512xbf16, #tpu.memory_space<vmem>>, vector<10x512xbf16>
    %cst = arith.constant dense<0.000000e+00> : vector<198x512xf32>
    %2 = tpu.matmul %0, %1, %cst {dimension_numbers = #tpu.dot_dimension_numbers<[1], [0], [0], [1], [0, 0, 1, 1], [], []>} : vector<198x10xbf16>, vector<10x512xbf16>, vector<198x512xf32> -> vector<198x512xf32>
    %c0_3 = arith.constant 0 : index
    %c0_4 = arith.constant 0 : index
    %3 = vector.load %arg3[%c0_3, %c0_4] : memref<1x512xf32, #tpu.memory_space<vmem>>, vector<1x512xf32>
    %4 = vector.broadcast %3 : vector<1x512xf32> to vector<198x512xf32>
    %5 = arith.mulf %2, %4 : vector<198x512xf32>
    %c0_5 = arith.constant 0 : index
    %c0_6 = arith.constant 0 : index
    %6 = vector.load %arg4[%c0_5, %c0_6] : memref<1x512xf32, #tpu.memory_space<vmem>>, vector<1x512xf32>
    %7 = vector.broadcast %6 : vector<1x512xf32> to vector<198x512xf32>
    %8 = arith.addf %5, %7 : vector<198x512xf32>
    %cst_7 = arith.constant 0.000000e+00 : f32
    %9 = vector.broadcast %cst_7 : f32 to vector<198x512xf32>
    %10 = arith.cmpf ogt, %8, %9 : vector<198x512xf32>
    %cst_8 = arith.constant 0.000000e+00 : f32
    %11 = vector.broadcast %cst_8 : f32 to vector<198x512xf32>
    %12 = arith.minimumf %8, %11 : vector<198x512xf32>
    %13 = math.exp %12 : vector<198x512xf32>
    %cst_9 = arith.constant 1.000000e+00 : f32
    %14 = vector.broadcast %cst_9 : f32 to vector<198x512xf32>
    %15 = arith.subf %13, %14 : vector<198x512xf32>
    %16 = arith.select %10, %8, %15 : vector<198x512xi1>, vector<198x512xf32>
    %c0_10 = arith.constant 0 : index
    %c0_11 = arith.constant 0 : index
    %17 = vector.load %arg5[%c0_10, %c0_11] : memref<198x512xf32, #tpu.memory_space<vmem>>, vector<198x512xf32>
    tpu.vector_store %arg5[%c0_10, %c0_11], %16 {strides = array<i32>} : memref<198x512xf32, #tpu.memory_space<vmem>>, vector<198x512xf32>,
    return
  }
  func.func @transform_0(%arg0: i32) -> (i32, i32) {
    %c0_i32 = arith.constant 0 : i32
    %c0_i32_0 = arith.constant 0 : i32
    return %arg0, %c0_i32 : i32, i32
  }
  func.func @transform_1(%arg0: i32) -> (i32, i32) {
    %c0_i32 = arith.constant 0 : i32
    %c0_i32_0 = arith.constant 0 : i32
    %c0_i32_1 = arith.constant 0 : i32
    return %c0_i32, %c0_i32_0 : i32, i32
  }
  func.func @transform_2(%arg0: i32) -> (i32, i32) {
    %c0_i32 = arith.constant 0 : i32
    %c0_i32_0 = arith.constant 0 : i32
    %c0_i32_1 = arith.constant 0 : i32
    return %c0_i32, %c0_i32_0 : i32, i32
  }
  func.func @transform_3(%arg0: i32) -> (i32, i32) {
    %c0_i32 = arith.constant 0 : i32
    %c0_i32_0 = arith.constant 0 : i32
    %c0_i32_1 = arith.constant 0 : i32
    return %c0_i32, %c0_i32_0 : i32, i32
  }
  func.func @transform_4(%arg0: i32) -> (i32, i32) {
    %c0_i32 = arith.constant 0 : i32
    %c0_i32_0 = arith.constant 0 : i32
    return %arg0, %c0_i32 : i32, i32
  }
}

</mosaic_0001>

<bundles_post_ra>
// kernel: tpu_custom_call.1
= control target key start
LH: loop header
LB: loop body
LE: loop exit
PB: predicated region body
PF: predicated region fallthrough
CT: control target
= control target key end

     0   :  { %vm167_vm0 = vcmask 1044480   ;;  %v1854_v3 = vmov 0   ;;  %vm127_vm1 = vcmask 80896   ;;  %s3088_s0 = inlined_call_operand.vmem [shape: bf16[198,10], index: 0, kind: input, shape index: {}]   ;;  %s3089_s1 = inlined_call_operand.vmem [shape: bf16[10,512], index: 1, kind: input, shape index: {}]   ;;  %s3090_s2 = inlined_call_operand.vmem [shape: f32[1,512], index: 2, kind: input, shape index: {}]   ;;  %s3091_s3 = inlined_call_operand.vmem [shape: f32[1,512], index: 3, kind: input, shape index: {}]   ;;  %s3092_s4 = inlined_call_operand.hbm [shape: f32[198,512], index: 4, kind: output, shape index: {}]  }
   0x1   :  { %v1611_v0 = vld [vmem:[%s3089_s1 + $0x4] ss:$16 sps:$4 sm:$0x1f]   ;;  %v1613_v1 = vld [vmem:[%s3089_s1 + $0xc] ss:$16 sps:$4 sm:$0x1f]   ;;  %212 = vmatprep.mubr.bf16.mxu0 %v1854_v3  ;;  %373 = vmatprep.mubr.bf16.mxu1 %v1854_v3 }
   0x2   :  { %1479 = vmatprep.subr.msk.bf16.mxu0 %vm167_vm0, %v1611_v0  ;;  %v1615_v2 = vld [vmem:[%s3089_s1] ss:$16 sps:$4 sm:$0x1f]   ;;  %v1616_v4 = vld [vmem:[%s3089_s1 + $0x8] ss:$16 sps:$4 sm:$0x1f]   ;;  %1493 = vmatprep.subr.msk.bf16.mxu1 %vm167_vm0, %v1613_v1 }
   0x3   :  { %v169_v5 = vsel %vm167_vm0, %v1615_v2, 0  ;;  %v1617_v6 = vld [vmem:[%s3088_s0] sm:$0xff]   ;;  %v175_v7 = vsel %vm167_vm0, %v1616_v4, 0  ;;  %v1618_v8 = vld [vmem:[%s3088_s0 + $0x8] sm:$0xff]  }
   0x4   :  { %181 = vmatpush1.bf16.msra.mxu0 %v169_v5  ;;  %342 = vmatpush1.bf16.msra.mxu1 %v175_v7 }
   0x7   :  { %1480 = vmatmul.mubr.msk.bf16.vlgmr.msra.gmra.mrb[0].mxu0 %vm127_vm1, %v1617_v6  ;;  %1494 = vmatmul.mubr.msk.bf16.vlgmr.msra.gmra.mrb[0].mxu1 %vm127_vm1, %v1617_v6 }
   0x8   :  { %222 = vmatprep.mubr.bf16.mxu0 %v1854_v3  ;;  %383 = vmatprep.mubr.bf16.mxu1 %v1854_v3 }
   0xf   :  { %1481 = vmatmul.mubr.msk.bf16.gmra.mrb[4].mxu0 %vm127_vm1, %v1618_v8 }
  0x10   :  { %9 = vsyncpa [#allocation3], 0  ;;  %1495 = vmatmul.mubr.msk.bf16.gmra.mrb[4].mxu1 %vm127_vm1, %v1618_v8  ;;  %232 = vmatprep.mubr.bf16.mxu0 %v1854_v3  ;;  %v1619_v9 = vld [vmem:[%s3088_s0 + $0x10] sm:$0xff]   ;;  %v1620_v10 = vld [vmem:[%s3088_s0 + $0x18] sm:$0xff]   ;;  %v504_v20 = vlaneseq }
  0x11   :  { %393 = vmatprep.mubr.bf16.mxu1 %v1854_v3  ;;  %v1621_v11 = vld [vmem:[%s3088_s0 + $0x20] sm:$0xff]   ;;  %v1622_v12 = vld [vmem:[%s3088_s0 + $0x28] sm:$0xff]   ;;  %v1623_v13 = vld [vmem:[%s3088_s0 + $0x30] sm:$0xff]  }
  0x12   :  { %v1624_v14 = vld [vmem:[%s3088_s0 + $0x38] sm:$0xff]   ;;  %v1625_v15 = vld [vmem:[%s3088_s0 + $0x40] sm:$0xff]   ;;  %v1626_v16 = vld [vmem:[%s3088_s0 + $0x48] sm:$0xff]   ;;  %v505_v21 = vshrl.u32 %v504_v20, 7 }
  0x13   :  { %v1627_v17 = vld [vmem:[%s3088_s0 + $0x50] sm:$0xff]   ;;  %v1628_v18 = vld [vmem:[%s3088_s0 + $0x58] sm:$0xff]   ;;  %v1629_v19 = vld [vmem:[%s3088_s0 + $0x60] ss:$0 sps:$4 sm:$0x77]   ;;  %s1855_s0 = smov [#allocation2]  }
  0x14   :  { %v506_v22 = vsub.s32 0, %v505_v21  ;;  %v502_v23 = vld [vmem:[%s3090_s2] sm:$0xf]  ;;  %v514_v24 = vsub.s32 2, %v505_v21  ;;  %v510_v25 = vsub.s32 1, %v505_v21  ;;  %v518_v26 = vsub.s32 3, %v505_v21 }
  0x15   :  { %v624_v27 = vld [vmem:[%s3091_s3] sm:$0xf]  ;;  %s1451_s2 = sshll.u32 %s1855_s0, 4  ;;  %s1452_s2 = int_to_ptr.vmem [resolvable:$true] %s1451_s2 }
  0x16   :  { %v1992_v28 = vrot.slane %v502_v23, %v506_v22  ;;  %v1994_v29 = vrot.slane %v502_v23, %v514_v24  ;;  %v1996_v30 = vrot.slane %v502_v23, %v510_v25  ;;  %v1998_v31 = vrot.slane %v624_v27, %v506_v22  ;;  %s1830_s3 = scalar_lea.vmem %s1452_s2, 12800  ;;  %p1835_p1 = scmp.lt.s32.totalorder %s1452_s2, %s1452_s2 }
  0x17   :  { %1482 = vmatmul.mubr.msk.bf16.gmra.mrb[8].mxu0 %vm127_vm1, %v1619_v9  ;;  %v2000_v32 = vrot.slane %v502_v23, %v518_v26  ;;  %v2002_v34 = vrot.slane %v624_v27, %v514_v24  ;;  %v2004_v35 = vrot.slane %v624_v27, %v510_v25  ;;  %v2007_v39 = vrot.slane %v624_v27, %v518_v26  ;;  %p1831_p0 = scmp.ne.s32.totalorder %s1452_s2, %s1830_s3  ;;  %p1836_p2 = scmp.lt.s32.totalorder %s1830_s3, %s1830_s3 }
  0x18   :  { %1496 = vmatmul.mubr.msk.bf16.gmra.mrb[8].mxu1 %vm127_vm1, %v1619_v9  ;;  %242 = vmatprep.mubr.bf16.mxu0 %v1854_v3 }
  0x19   :  { %403 = vmatprep.mubr.bf16.mxu1 %v1854_v3  ;;  %p1837_p3 = por %p1836_p2, %p1835_p1 }
  0x1b   :  { %p1838_p4 = pnand %p1837_p3, %p1831_p0 }
  0x1f   :  { %1483 = vmatmul.mubr.msk.bf16.gmra.mrb[12].mxu0 %vm127_vm1, %v1620_v10 }
  0x20   :  { %1497 = vmatmul.mubr.msk.bf16.gmra.mrb[12].mxu1 %vm127_vm1, %v1620_v10  ;;  %252 = vmatprep.mubr.bf16.mxu0 %v1854_v3 }
  0x21   :  { %413 = vmatprep.mubr.bf16.mxu1 %v1854_v3 }
  0x27   :  { %1484 = vmatmul.mubr.msk.bf16.gmra.mrb[16].mxu0 %vm127_vm1, %v1621_v11 }
  0x28   :  { %1498 = vmatmul.mubr.msk.bf16.gmra.mrb[16].mxu1 %vm127_vm1, %v1621_v11  ;;  %262 = vmatprep.mubr.bf16.mxu0 %v1854_v3 }
  0x29   :  { %423 = vmatprep.mubr.bf16.mxu1 %v1854_v3 }
  0x2f   :  { %1485 = vmatmul.mubr.msk.bf16.gmra.mrb[20].mxu0 %vm127_vm1, %v1622_v12 }
  0x30   :  { %1499 = vmatmul.mubr.msk.bf16.gmra.mrb[20].mxu1 %vm127_vm1, %v1622_v12  ;;  %272 = vmatprep.mubr.bf16.mxu0 %v1854_v3 }
  0x31   :  { %433 = vmatprep.mubr.bf16.mxu1 %v1854_v3 }
  0x37   :  { %1486 = vmatmul.mubr.msk.bf16.gmra.mrb[24].mxu0 %vm127_vm1, %v1623_v13 }
  0x38   :  { %1500 = vmatmul.mubr.msk.bf16.gmra.mrb[24].mxu1 %vm127_vm1, %v1623_v13  ;;  %282 = vmatprep.mubr.bf16.mxu0 %v1854_v3 }
  0x39   :  { %443 = vmatprep.mubr.bf16.mxu1 %v1854_v3 }
  0x3f   :  { %1487 = vmatmul.mubr.msk.bf16.gmra.mrb[28].mxu0 %vm127_vm1, %v1624_v14 }
  0x40   :  { %1501 = vmatmul.mubr.msk.bf16.gmra.mrb[28].mxu1 %vm127_vm1, %v1624_v14  ;;  %292 = vmatprep.mubr.bf16.mxu0 %v1854_v3 }
  0x41   :  { %453 = vmatprep.mubr.bf16.mxu1 %v1854_v3 }
  0x47   :  { %1488 = vmatmul.mubr.msk.bf16.gmra.mrb[32].mxu0 %vm127_vm1, %v1625_v15 }
  0x48   :  { %1502 = vmatmul.mubr.msk.bf16.gmra.mrb[32].mxu1 %vm127_vm1, %v1625_v15  ;;  %302 = vmatprep.mubr.bf16.mxu0 %v1854_v3 }
  0x49   :  { %463 = vmatprep.mubr.bf16.mxu1 %v1854_v3 }
  0x4f   :  { %1489 = vmatmul.mubr.msk.bf16.gmra.mrb[36].mxu0 %vm127_vm1, %v1626_v16 }
  0x50   :  { %1503 = vmatmul.mubr.msk.bf16.gmra.mrb[36].mxu1 %vm127_vm1, %v1626_v16  ;;  %312 = vmatprep.mubr.bf16.mxu0 %v1854_v3 }
  0x51   :  { %473 = vmatprep.mubr.bf16.mxu1 %v1854_v3 }
  0x57   :  { %1490 = vmatmul.mubr.msk.bf16.gmra.mrb[40].mxu0 %vm127_vm1, %v1627_v17 }
  0x58   :  { %1504 = vmatmul.mubr.msk.bf16.gmra.mrb[40].mxu1 %vm127_vm1, %v1627_v17  ;;  %322 = vmatprep.mubr.bf16.mxu0 %v1854_v3 }
  0x59   :  { %483 = vmatprep.mubr.bf16.mxu1 %v1854_v3 }
  0x5f   :  { %1491 = vmatmul.mubr.msk.bf16.gmra.mrb[44].mxu0 %vm127_vm1, %v1628_v18 }
  0x60   :  { %1505 = vmatmul.mubr.msk.bf16.gmra.mrb[44].mxu1 %vm127_vm1, %v1628_v18  ;;  %332 = vmatprep.mubr.bf16.mxu0 %v1854_v3 }
  0x61   :  { %493 = vmatprep.mubr.bf16.mxu1 %v1854_v3 }
  0x67   :  { %1492 = vmatmul.mubr.msk.bf16.gmra.mrb[48].mxu0 %vm127_vm1, %v1629_v19 }
  0x68   :  { %1506 = vmatmul.mubr.msk.bf16.gmra.mrb[48].mxu1 %vm127_vm1, %v1629_v19 }
  0xda   :  { %v214_v33 = vpop.f32.mrb[0].mxu0  ;;  %v375_v37 = vpop.f32.mrb[0].mxu1 }
  0xdb   :  { %v524_v36 = vmul.f32 %v1992_v28, %v214_v33  ;;  %v216_v38 = vpop.f32.mrb[1].mxu0  ;;  %v526_v40 = vmul.f32 %v1994_v29, %v375_v37  ;;  %v377_v42 = vpop.f32.mrb[1].mxu1 }
  0xdc   :  { %v525_v41 = vmul.f32 %v1996_v30, %v216_v38  ;;  %v218_v43 = vpop.f32.mrb[2].mxu0  ;;  %v527_v45 = vmul.f32 %v2000_v32, %v377_v42  ;;  %v379_v47 = vpop.f32.mrb[2].mxu1 }
  0xdd   :  { %v2012_v44 = vadd.f32 %v1998_v31, %v524_v36  ;;  %v528_v46 = vmul.f32 %v1992_v28, %v218_v43  ;;  %v220_v48 = vpop.f32.mrb[3].mxu0  ;;  %v2017_v49 = vadd.f32 %v2002_v34, %v526_v40  ;;  %v530_v51 = vmul.f32 %v1994_v29, %v379_v47  ;;  %v381_v52 = vpop.f32.mrb[3].mxu1 }
  0xde   :  { %v2020_v50 = vadd.f32 %v2004_v35, %v525_v41  ;;  %v2025_v54 = vadd.f32 %v2007_v39, %v527_v45  ;;  %v529_v56 = vmul.f32 %v1996_v30, %v220_v48  ;;  %v531_v4 = vmul.f32 %v2000_v32, %v381_v52 }
  0xdf   :  { %v846_v53 = vmin.f32 %v2012_v44, 0.0  ;;  %v2028_v55 = vadd.f32 %v1998_v31, %v528_v46  ;;  %v848_v57 = vmin.f32 %v2017_v49, 0.0  ;;  %v2036_v0 = vadd.f32 %v2002_v34, %v530_v51 }
  0xe0   :  { %v847_v58 = vmin.f32 %v2020_v50, 0.0  ;;  %v849_v60 = vmin.f32 %v2025_v54, 0.0  ;;  %v2039_v3 = vadd.f32 %v2004_v35, %v529_v56  ;;  %v2045_v12 = vadd.f32 %v2007_v39, %v531_v4 }
  0xe1   :  { %v946_v59 = vmul.f32 1.442695, %v846_v53  ;;  %v950_v61 = vmul.f32 1.442695, %v848_v57  ;;  %v850_v63 = vmin.f32 %v2028_v55, 0.0  ;;  %v852_v8 = vmin.f32 %v2036_v0, 0.0 }
  0xe2   :  { %v948_v62 = vmul.f32 1.442695, %v847_v58  ;;  %v224_v1 = vpop.f32.mrb[4].mxu0  ;;  %v952_v2 = vmul.f32 1.442695, %v849_v60  ;;  %v851_v11 = vmin.f32 %v2039_v3, 0.0 }
  0xe3   :  { %1630 = vpow2.f32 %v946_v59  ;;  %v385_v5 = vpop.f32.mrb[4].mxu1  ;;  %v226_v6 = vpop.f32.mrb[5].mxu0  ;;  %v954_v7 = vmul.f32 1.442695, %v850_v63  ;;  %v958_v15 = vmul.f32 1.442695, %v852_v8  ;;  %v532_v16 = vmul.f32 %v1992_v28, %v224_v1 }
  0xe4   :  { %1632 = vpow2.f32 %v950_v61  ;;  %v387_v9 = vpop.f32.mrb[5].mxu1  ;;  %v228_v10 = vpop.f32.mrb[6].mxu0  ;;  %v534_v17 = vmul.f32 %v1994_v29, %v385_v5  ;;  %vm746_vm2 = vcmp.gt.f32.partialorder %v2012_v44, 0.0  ;;  %v956_v19 = vmul.f32 1.442695, %v851_v11 }
  0xe5   :  { %1634 = vpow2.f32 %v948_v62  ;;  %v389_v13 = vpop.f32.mrb[6].mxu1  ;;  %v230_v14 = vpop.f32.mrb[7].mxu0  ;;  %v853_v20 = vmin.f32 %v2045_v12, 0.0  ;;  %vm748_vm3 = vcmp.gt.f32.partialorder %v2017_v49, 0.0  ;;  %v2055_v21 = vadd.f32 %v1998_v31, %v532_v16 }
  0xe6   :  { %1636 = vpow2.f32 %v952_v2  ;;  %v2049_v18 = vpop.f32.mrb[7].mxu1  ;;  %v2058_v22 = vadd.f32 %v2002_v34, %v534_v17  ;;  %v533_v23 = vmul.f32 %v1996_v30, %v226_v6  ;;  %v535_v25 = vmul.f32 %v2000_v32, %v387_v9 }
  0xe7   :  { %1638 = vpow2.f32 %v954_v7  ;;  %v960_v24 = vmul.f32 1.442695, %v853_v20  ;;  %v536_v26 = vmul.f32 %v1992_v28, %v228_v10  ;;  %vm747_vm4 = vcmp.gt.f32.partialorder %v2020_v50, 0.0 }
  0xe8   :  { %1640 = vpow2.f32 %v958_v15  ;;  %vm749_vm5 = vcmp.gt.f32.partialorder %v2025_v54, 0.0  ;;  %v854_v27 = vmin.f32 %v2055_v21, 0.0  ;;  %v856_v33 = vmin.f32 %v2058_v22, 0.0 }
  0xe9   :  { %1642 = vpow2.f32 %v956_v19  ;;  %vm750_vm6 = vcmp.gt.f32.partialorder %v2028_v55, 0.0  ;;  %v2071_v37 = vadd.f32 %v2004_v35, %v533_v23  ;;  %v2074_v38 = vadd.f32 %v2007_v39, %v535_v25 }
  0xea   :  { %v2067_v36 = vpop.f32.mrb[8].mxu0  ;;  %1644 = vpow2.f32 %v960_v24  ;;  %v2077_v40 = vadd.f32 %v1998_v31, %v536_v26  ;;  %v962_v43 = vmul.f32 1.442695, %v854_v27  ;;  %v966_v45 = vmul.f32 1.442695, %v856_v33 }
  0xeb   :  { %v2079_v41 = vpop.f32.mrb[8].mxu1  ;;  %v2081_v42 = vpop.f32.mrb[9].mxu0  ;;  %v538_v46 = vmul.f32 %v1994_v29, %v389_v13  ;;  %vm752_vm7 = vcmp.gt.f32.partialorder %v2036_v0, 0.0  ;;  %v855_v52 = vmin.f32 %v2071_v37, 0.0  ;;  %v857_v53 = vmin.f32 %v2074_v38, 0.0 }
  0xec   :  { %v2084_v47 = vpop.f32.mrb[9].mxu1  ;;  %v2086_v48 = vpop.f32.mrb[10].mxu0  ;;  %v537_v56 = vmul.f32 %v1996_v30, %v230_v14  ;;  %vm751_vm8 = vcmp.gt.f32.partialorder %v2039_v3, 0.0  ;;  %1646 = vpow2.f32 %v962_v43  ;;  %v858_v61 = vmin.f32 %v2077_v40, 0.0 }
  0xed   :  { %v1631_v51 = vpop.eup %1630  ;;  %v2092_v57 = vpop.f32.mrb[10].mxu1  ;;  %1648 = vpow2.f32 %v966_v45  ;;  %v964_v2 = vmul.f32 1.442695, %v855_v52  ;;  %v968_v4 = vmul.f32 1.442695, %v857_v53  ;;  %v2104_v9 = vadd.f32 %v2002_v34, %v538_v46 }
  0xee   :  { %v2094_v58 = vpop.f32.mrb[11].mxu0  ;;  %v1633_v59 = vpop.eup %1632  ;;  %v1507_v60 = vadd.f32 -1.0, %v1631_v51  ;;  %v970_v8 = vmul.f32 1.442695, %v858_v61  ;;  %v2110_v14 = vadd.f32 %v2004_v35, %v537_v56  ;;  %vm753_vm9 = vcmp.gt.f32.partialorder %v2045_v12, 0.0 }
  0xef   :  { %v2098_v62 = vpop.f32.mrb[11].mxu1  ;;  %v1635_v63 = vpop.eup %1634  ;;  %v1509_v1 = vadd.f32 -1.0, %v1633_v59  ;;  %1650 = vpow2.f32 %v964_v2  ;;  %v860_v23 = vmin.f32 %v2104_v9, 0.0  ;;  %vm754_vm10 = vcmp.gt.f32.partialorder %v2055_v21, 0.0 }
  0xf0   :  { %v1637_v5 = vpop.eup %1636  ;;  %v1246_v6 = vsel %vm746_vm2, %v2012_v44, %v1507_v60  ;;  %v1508_v7 = vadd.f32 -1.0, %v1635_v63  ;;  %1652 = vpow2.f32 %v968_v4  ;;  %v859_v27 = vmin.f32 %v2110_v14, 0.0 }
  0xf1   :  { %v1639_v10 = vpop.eup %1638  ;;  %1346 = vst [vmem:[#allocation2] sm:$0xff] %v1246_v6  ;;  %v1248_v11 = vsel %vm748_vm3, %v2017_v49, %v1509_v1  ;;  %v1510_v13 = vadd.f32 -1.0, %v1637_v5  ;;  %1654 = vpow2.f32 %v970_v8  ;;  %v974_v46 = vmul.f32 1.442695, %v860_v23 }
  0xf2   :  { %v1641_v15 = vpop.eup %1640  ;;  %1348 = vst [vmem:[#allocation2 + $0x10] sm:$0xff] %v1248_v11  ;;  %v1247_v44 = vsel %vm747_vm4, %v2020_v50, %v1508_v7  ;;  %v1511_v16 = vadd.f32 -1.0, %v1639_v10  ;;  %v2116_v17 = vpop.f32.mrb[12].mxu0  ;;  %v539_v51 = vmul.f32 %v2000_v32, %v2049_v18  ;;  %v972_v60 = vmul.f32 1.442695, %v859_v27 }
  0xf3   :  { %v1643_v19 = vpop.eup %1642  ;;  %1347 = vst [vmem:[#allocation2 + $0x8] sm:$0xff] %v1247_v44  ;;  %v1249_v49 = vsel %vm749_vm5, %v2025_v54, %v1510_v13  ;;  %v1513_v20 = vadd.f32 -1.0, %v1641_v15  ;;  %v2122_v24 = vpop.f32.mrb[12].mxu1  ;;  %1656 = vpow2.f32 %v974_v46  ;;  %v541_v63 = vmul.f32 %v1996_v30, %v2081_v42 }
  0xf4   :  { %v2124_v25 = vpop.f32.mrb[13].mxu0  ;;  %1349 = vst [vmem:[#allocation2 + $0x18] sm:$0xff] %v1249_v49  ;;  %v1250_v50 = vsel %vm750_vm6, %v2028_v55, %v1511_v16  ;;  %v1512_v26 = vadd.f32 -1.0, %v1643_v19  ;;  %v2131_v33 = vpop.f32.mrb[13].mxu1  ;;  %v540_v55 = vmul.f32 %v1992_v28, %v2067_v36  ;;  %v2154_v18 = vadd.f32 %v2007_v39, %v539_v51 }
  0xf5   :  { %v2133_v54 = vpop.f32.mrb[14].mxu0  ;;  %v1645_v43 = vpop.eup %1644  ;;  %1350 = vst [vmem:[#allocation2 + $0x20] sm:$0xff] %v1250_v50  ;;  %v1252_v45 = vsel %vm752_vm7, %v2036_v0, %v1513_v20  ;;  %v542_v0 = vmul.f32 %v1994_v29, %v2079_v41  ;;  %1658 = vpow2.f32 %v972_v60  ;;  %v543_v2 = vmul.f32 %v2000_v32, %v2084_v47 }
  0xf6   :  { %v2142_v52 = vpop.f32.mrb[14].mxu1  ;;  %v2144_v53 = vpop.f32.mrb[15].mxu0  ;;  %1352 = vst [vmem:[#allocation2 + $0x30] sm:$0xff] %v1252_v45  ;;  %v1251_v56 = vsel %vm751_vm8, %v2039_v3, %v1512_v26  ;;  %v1514_v59 = vadd.f32 -1.0, %v1645_v43  ;;  %v2157_v36 = vadd.f32 %v1998_v31, %v540_v55  ;;  %vm756_vm11 = vcmp.gt.f32.partialorder %v2058_v22, 0.0 }
  0xf7   :  { %v2151_v61 = vpop.f32.mrb[15].mxu1  ;;  %1351 = vst [vmem:[#allocation2 + $0x28] sm:$0xff] %v1251_v56  ;;  %v1647_v1 = vpop.eup %1646  ;;  %v2165_v41 = vadd.f32 %v2002_v34, %v542_v0  ;;  %vm755_vm12 = vcmp.gt.f32.partialorder %v2071_v37, 0.0  ;;  %v861_v42 = vmin.f32 %v2154_v18, 0.0  ;;  %vm757_vm13 = vcmp.gt.f32.partialorder %v2074_v38, 0.0 }
  0xf8   :  { %v1253_v3 = vsel %vm753_vm9, %v2045_v12, %v1514_v59  ;;  %v1649_v4 = vpop.eup %1648  ;;  %v1515_v5 = vadd.f32 -1.0, %v1647_v1  ;;  %v862_v12 = vmin.f32 %v2157_v36, 0.0  ;;  %v2181_v13 = vadd.f32 %v2004_v35, %v541_v63 }
  0xf9   :  { %1353 = vst [vmem:[#allocation2 + $0x38] sm:$0xff] %v1253_v3  ;;  %v1517_v6 = vadd.f32 -1.0, %v1649_v4  ;;  %v864_v7 = vmin.f32 %v2165_v41, 0.0  ;;  %v1651_v10 = vpop.eup %1650  ;;  %v976_v11 = vmul.f32 1.442695, %v861_v42  ;;  %v2184_v15 = vadd.f32 %v2007_v39, %v543_v2 }
  0xfa   :  { %v2175_v8 = vpop.f32.mrb[16].mxu0  ;;  %v1254_v47 = vsel %vm754_vm10, %v2055_v21, %v1515_v5  ;;  %v1653_v19 = vpop.eup %1652  ;;  %v1516_v20 = vadd.f32 -1.0, %v1651_v10  ;;  %v978_v23 = vmul.f32 1.442695, %v862_v12  ;;  %vm758_vm14 = vcmp.gt.f32.partialorder %v2077_v40, 0.0 }
  0xfb   :  { %v2186_v44 = vpop.f32.mrb[16].mxu1  ;;  %v2188_v16 = vpop.f32.mrb[17].mxu0  ;;  %1354 = vst [vmem:[#allocation2 + $0x40] sm:$0xff] %v1254_v47  ;;  %v1256_v49 = vsel %vm756_vm11, %v2058_v22, %v1517_v6  ;;  %v982_v21 = vmul.f32 1.442695, %v864_v7  ;;  %v1518_v27 = vadd.f32 -1.0, %v1653_v19  ;;  %1660 = vpow2.f32 %v976_v11 }
  0xfc   :  { %v2193_v50 = vpop.f32.mrb[17].mxu1  ;;  %v1655_v26 = vpop.eup %1654  ;;  %1356 = vst [vmem:[#allocation2 + $0x50] sm:$0xff] %v1256_v49  ;;  %v863_v43 = vmin.f32 %v2181_v13, 0.0  ;;  %v1255_v22 = vsel %vm755_vm12, %v2071_v37, %v1516_v20  ;;  %vm760_vm15 = vcmp.gt.f32.partialorder %v2104_v9, 0.0  ;;  %1662 = vpow2.f32 %v978_v23 }
  0xfd   :  { %v2197_v45 = vpop.f32.mrb[18].mxu0  ;;  %v2199_v46 = vpop.f32.mrb[18].mxu1  ;;  %v1519_v51 = vadd.f32 -1.0, %v1655_v26  ;;  %1355 = vst [vmem:[#allocation2 + $0x48] sm:$0xff] %v1255_v22  ;;  %v1257_v59 = vsel %vm757_vm13, %v2074_v38, %v1518_v27  ;;  %1664 = vpow2.f32 %v982_v21  ;;  %v865_v0 = vmin.f32 %v2184_v15, 0.0 }
  0xfe   :  { %v2205_v55 = vpop.f32.mrb[19].mxu0  ;;  %v2207_v56 = vpop.f32.mrb[19].mxu1  ;;  %v980_v60 = vmul.f32 1.442695, %v863_v43  ;;  %1357 = vst [vmem:[#allocation2 + $0x58] sm:$0xff] %v1257_v59  ;;  %v544_v63 = vmul.f32 %v1992_v28, %v2086_v48  ;;  %v546_v1 = vmul.f32 %v1994_v29, %v2092_v57  ;;  %v545_v3 = vmul.f32 %v1996_v30, %v2094_v58 }
  0xff   :  { %v1258_v37 = vsel %vm758_vm14, %v2077_v40, %v1519_v51  ;;  %v1657_v2 = vpop.eup %1656  ;;  %v984_v38 = vmul.f32 1.442695, %v865_v0  ;;  %v547_v4 = vmul.f32 %v2000_v32, %v2098_v62  ;;  %v548_v5 = vmul.f32 %v1992_v28, %v2116_v17 }
 0x100   :  { %1358 = vst [vmem:[#allocation2 + $0x60] sm:$0xff] %v1258_v37  ;;  %1666 = vpow2.f32 %v980_v60  ;;  %v1659_v40 = vpop.eup %1658  ;;  %v1521_v42 = vadd.f32 -1.0, %v1657_v2  ;;  %v2227_v48 = vadd.f32 %v1998_v31, %v544_v63  ;;  %v2230_v57 = vadd.f32 %v2002_v34, %v546_v1 }
 0x101   :  { %v2233_v58 = vadd.f32 %v2004_v35, %v545_v3  ;;  %v1520_v12 = vadd.f32 -1.0, %v1659_v40  ;;  %1668 = vpow2.f32 %v984_v38  ;;  %v2238_v62 = vadd.f32 %v2007_v39, %v547_v4 }
 0x102   :  { %v2235_v6 = vpop.f32.mrb[20].mxu0  ;;  %v2241_v17 = vadd.f32 %v1998_v31, %v548_v5  ;;  %v1260_v47 = vsel %vm760_vm15, %v2104_v9, %v1521_v42  ;;  %vm759_vm0 = vcmp.gt.f32.partialorder %v2110_v14, 0.0  ;;  %v866_v11 = vmin.f32 %v2227_v48, 0.0 }
 0x103   :  { %v2243_v7 = vpop.f32.mrb[20].mxu1  ;;  %v2245_v10 = vpop.f32.mrb[21].mxu0  ;;  %1360 = vst [vmem:[#allocation2 + $0x70] sm:$0xff] %v1260_v47  ;;  %v1259_v20 = vsel %vm759_vm0, %v2110_v14, %v1520_v12  ;;  %vm761_vm1 = vcmp.gt.f32.partialorder %v2154_v18, 0.0  ;;  %v868_v23 = vmin.f32 %v2230_v57, 0.0  ;;  %v867_v21 = vmin.f32 %v2233_v58, 0.0 }
 0x104   :  { %v2252_v19 = vpop.f32.mrb[21].mxu1  ;;  %v2254_v49 = vpop.f32.mrb[22].mxu0  ;;  %1359 = vst [vmem:[#allocation2 + $0x68] sm:$0xff] %v1259_v20  ;;  %vm762_vm2 = vcmp.gt.f32.partialorder %v2157_v36, 0.0  ;;  %vm764_vm3 = vcmp.gt.f32.partialorder %v2165_v41, 0.0  ;;  %v869_v43 = vmin.f32 %v2238_v62, 0.0  ;;  %v550_v0 = vmul.f32 %v1994_v29, %v2122_v24 }
 0x105   :  { %v2260_v26 = vpop.f32.mrb[22].mxu1  ;;  %v2262_v9 = vpop.f32.mrb[23].mxu0  ;;  %v986_v27 = vmul.f32 1.442695, %v866_v11  ;;  %v990_v51 = vmul.f32 1.442695, %v868_v23  ;;  %v549_v3 = vmul.f32 %v1996_v30, %v2124_v25 }
 0x106   :  { %v2267_v22 = vpop.f32.mrb[23].mxu1  ;;  %v1661_v14 = vpop.eup %1660  ;;  %v988_v59 = vmul.f32 1.442695, %v867_v21  ;;  %v870_v60 = vmin.f32 %v2241_v17, 0.0  ;;  %v992_v1 = vmul.f32 1.442695, %v869_v43  ;;  %v2275_v5 = vadd.f32 %v2002_v34, %v550_v0 }
 0x107   :  { %v1663_v37 = vpop.eup %1662  ;;  %v1522_v63 = vadd.f32 -1.0, %v1661_v14  ;;  %1670 = vpow2.f32 %v986_v27  ;;  %v2281_v24 = vadd.f32 %v2004_v35, %v549_v3  ;;  %vm763_vm4 = vcmp.gt.f32.partialorder %v2181_v13, 0.0 }
 0x108   :  { %v1665_v2 = vpop.eup %1664  ;;  %v1523_v38 = vadd.f32 -1.0, %v1663_v37  ;;  %1672 = vpow2.f32 %v990_v51  ;;  %v994_v4 = vmul.f32 1.442695, %v870_v60  ;;  %v872_v11 = vmin.f32 %v2275_v5, 0.0 }
 0x109   :  { %v1261_v40 = vsel %vm761_vm1, %v2154_v18, %v1522_v63  ;;  %v1525_v42 = vadd.f32 -1.0, %v1665_v2  ;;  %1674 = vpow2.f32 %v988_v59  ;;  %vm765_vm5 = vcmp.gt.f32.partialorder %v2184_v15, 0.0 }
 0x10a   :  { %v2283_v12 = vpop.f32.mrb[24].mxu0  ;;  %v1667_v47 = vpop.eup %1666  ;;  %1361 = vst [vmem:[#allocation2 + $0x78] sm:$0xff] %v1261_v40  ;;  %v1262_v25 = vsel %vm762_vm2, %v2157_v36, %v1523_v38  ;;  %1676 = vpow2.f32 %v992_v1  ;;  %v998_v14 = vmul.f32 1.442695, %v872_v11  ;;  %v871_v51 = vmin.f32 %v2281_v24, 0.0 }
 0x10b   :  { %v2290_v20 = vpop.f32.mrb[24].mxu1  ;;  %v2292_v18 = vpop.f32.mrb[25].mxu0  ;;  %1362 = vst [vmem:[#allocation2 + $0x80] sm:$0xff] %v1262_v25  ;;  %v1264_v23 = vsel %vm764_vm3, %v2165_v41, %v1525_v42  ;;  %v1524_v21 = vadd.f32 -1.0, %v1667_v47  ;;  %1678 = vpow2.f32 %v994_v4  ;;  %v551_v59 = vmul.f32 %v2000_v32, %v2131_v33 }
 0x10c   :  { %v2298_v27 = vpop.f32.mrb[25].mxu1  ;;  %v2300_v36 = vpop.f32.mrb[26].mxu0  ;;  %1364 = vst [vmem:[#allocation2 + $0x90] sm:$0xff] %v1264_v23  ;;  %v552_v60 = vmul.f32 %v1992_v28, %v2133_v54  ;;  %v554_v1 = vmul.f32 %v1994_v29, %v2142_v52  ;;  %v553_v3 = vmul.f32 %v1996_v30, %v2144_v53  ;;  %1680 = vpow2.f32 %v998_v14 }
 0x10d   :  { %v1669_v43 = vpop.eup %1668  ;;  %v2307_v41 = vpop.f32.mrb[26].mxu1  ;;  %v1263_v37 = vsel %vm763_vm4, %v2181_v13, %v1524_v21  ;;  %v996_v33 = vmul.f32 1.442695, %v871_v51  ;;  %v2321_v54 = vadd.f32 %v2007_v39, %v551_v59  ;;  %v555_v4 = vmul.f32 %v2000_v32, %v2151_v61 }
 0x10e   :  { %v2309_v0 = vpop.f32.mrb[27].mxu0  ;;  %v1526_v63 = vadd.f32 -1.0, %v1669_v43  ;;  %v2318_v2 = vpop.f32.mrb[27].mxu1  ;;  %1363 = vst [vmem:[#allocation2 + $0x88] sm:$0xff] %v1263_v37  ;;  %v2324_v38 = vadd.f32 %v1998_v31, %v552_v60  ;;  %v2330_v52 = vadd.f32 %v2002_v34, %v554_v1  ;;  %v2333_v53 = vadd.f32 %v2004_v35, %v553_v3 }
 0x10f   :  { %vm766_vm6 = vcmp.gt.f32.partialorder %v2227_v48, 0.0  ;;  %vm768_vm7 = vcmp.gt.f32.partialorder %v2230_v57, 0.0  ;;  %1682 = vpow2.f32 %v996_v33  ;;  %v873_v40 = vmin.f32 %v2321_v54, 0.0 }
 0x110   :  { %v1265_v13 = vsel %vm765_vm5, %v2184_v15, %v1526_v63  ;;  %vm767_vm8 = vcmp.gt.f32.partialorder %v2233_v58, 0.0  ;;  %vm769_vm9 = vcmp.gt.f32.partialorder %v2238_v62, 0.0  ;;  %v874_v15 = vmin.f32 %v2324_v38, 0.0 }
 0x111   :  { %1365 = vst [vmem:[#allocation2 + $0x98] sm:$0xff] %v1265_v13  ;;  %v1671_v42 = vpop.eup %1670  ;;  %v876_v47 = vmin.f32 %v2330_v52, 0.0  ;;  %v1000_v23 = vmul.f32 1.442695, %v873_v40  ;;  %v875_v21 = vmin.f32 %v2333_v53, 0.0  ;;  %v2348_v43 = vadd.f32 %v2007_v39, %v555_v4 }
 0x112   :  { %v2344_v25 = vpop.f32.mrb[28].mxu0  ;;  %v1673_v61 = vpop.eup %1672  ;;  %v1527_v11 = vadd.f32 -1.0, %v1671_v42  ;;  %v1002_v37 = vmul.f32 1.442695, %v874_v15  ;;  %v556_v1 = vmul.f32 %v1992_v28, %v2175_v8  ;;  %vm770_vm10 = vcmp.gt.f32.partialorder %v2241_v17, 0.0 }
 0x113   :  { %v2350_v14 = vpop.f32.mrb[28].mxu1  ;;  %v2352_v51 = vpop.f32.mrb[29].mxu0  ;;  %v1529_v60 = vadd.f32 -1.0, %v1673_v61  ;;  %v1006_v63 = vmul.f32 1.442695, %v876_v47  ;;  %1684 = vpow2.f32 %v1000_v23  ;;  %vm772_vm11 = vcmp.gt.f32.partialorder %v2275_v5, 0.0 }
 0x114   :  { %3093 = vst [vmem:[#allocation5_spill] sm:$0xff] %v2352_v51  ;;  %v1675_v59 = vpop.eup %1674  ;;  %v2356_v3 = vpop.f32.mrb[29].mxu1  ;;  %v1266_v13 = vsel %vm766_vm6, %v2227_v48, %v1527_v11  ;;  %v1004_v40 = vmul.f32 1.442695, %v875_v21  ;;  %1686 = vpow2.f32 %v1002_v37  ;;  %v877_v21 = vmin.f32 %v2348_v43, 0.0 }
 0x115   :  { %v1677_v33 = vpop.eup %1676  ;;  %v1528_v4 = vadd.f32 -1.0, %v1675_v59  ;;  %v2361_v42 = vpop.f32.mrb[30].mxu0  ;;  %1366 = vst [vmem:[#allocation2 + $0xa0] sm:$0xff] %v1266_v13  ;;  %v1268_v8 = vsel %vm768_vm7, %v2230_v57, %v1529_v60  ;;  %1688 = vpow2.f32 %v1006_v63  ;;  %v2381_v59 = vadd.f32 %v1998_v31, %v556_v1 }
 0x116   :  { %v2363_v51 = vpop.f32.mrb[30].mxu1  ;;  %v1679_v61 = vpop.eup %1678  ;;  %v1530_v15 = vadd.f32 -1.0, %v1677_v33  ;;  %1368 = vst [vmem:[#allocation2 + $0xb0] sm:$0xff] %v1268_v8  ;;  %1690 = vpow2.f32 %v1004_v40  ;;  %v558_v60 = vmul.f32 %v1994_v29, %v2186_v44  ;;  %v1008_v63 = vmul.f32 1.442695, %v877_v21 }
 0x117   :  { %v2369_v47 = vpop.f32.mrb[31].mxu0  ;;  %v2371_v48 = vpop.f32.mrb[31].mxu1  ;;  %v1267_v11 = vsel %vm767_vm8, %v2233_v58, %v1528_v4  ;;  %v1531_v23 = vadd.f32 -1.0, %v1679_v61  ;;  %v557_v33 = vmul.f32 %v1996_v30, %v2188_v16  ;;  %v878_v13 = vmin.f32 %v2381_v59, 0.0 }
 0x118   :  { %1367 = vst [vmem:[#allocation2 + $0xa8] sm:$0xff] %v1267_v11  ;;  %v1269_v57 = vsel %vm769_vm9, %v2238_v62, %v1530_v15  ;;  %v1681_v37 = vpop.eup %1680  ;;  %v559_v62 = vmul.f32 %v2000_v32, %v2193_v50  ;;  %v2395_v44 = vadd.f32 %v2002_v34, %v558_v60  ;;  %1692 = vpow2.f32 %v1008_v63 }
 0x119   :  { %1369 = vst [vmem:[#allocation2 + $0xb8] sm:$0xff] %v1269_v57  ;;  %v1270_v58 = vsel %vm770_vm10, %v2241_v17, %v1531_v23  ;;  %v1533_v1 = vadd.f32 -1.0, %v1681_v37  ;;  %v1683_v40 = vpop.eup %1682  ;;  %v2400_v17 = vadd.f32 %v2004_v35, %v557_v33  ;;  %v560_v50 = vmul.f32 %v1992_v28, %v2197_v45 }
 0x11a   :  { %1370 = vst [vmem:[#allocation2 + $0xc0] sm:$0xff] %v1270_v58  ;;  %v2397_v4 = vpop.f32.mrb[32].mxu0  ;;  %v2403_v16 = vadd.f32 %v2007_v39, %v559_v62  ;;  %vm771_vm12 = vcmp.gt.f32.partialorder %v2281_v24, 0.0  ;;  %v1532_v11 = vadd.f32 -1.0, %v1683_v40  ;;  %v1010_v23 = vmul.f32 1.442695, %v878_v13 }
 0x11b   :  { %v2407_v61 = vpop.f32.mrb[32].mxu1  ;;  %v2409_v8 = vpop.f32.mrb[33].mxu0  ;;  %v1272_v15 = vsel %vm772_vm11, %v2275_v5, %v1533_v1  ;;  %vm773_vm13 = vcmp.gt.f32.partialorder %v2321_v54, 0.0  ;;  %vm774_vm14 = vcmp.gt.f32.partialorder %v2324_v38, 0.0  ;;  %v880_v45 = vmin.f32 %v2395_v44, 0.0 }
 0x11c   :  { %v2413_v21 = vpop.f32.mrb[33].mxu1  ;;  %v2415_v57 = vpop.f32.mrb[34].mxu0  ;;  %1372 = vst [vmem:[#allocation2 + $0xd0] sm:$0xff] %v1272_v15  ;;  %v879_v60 = vmin.f32 %v2400_v17, 0.0  ;;  %v1271_v58 = vsel %vm771_vm12, %v2281_v24, %v1532_v11  ;;  %1694 = vpow2.f32 %v1010_v23  ;;  %v881_v63 = vmin.f32 %v2403_v16, 0.0 }
 0x11d   :  { %3094 = vst [vmem:[#allocation6_spill] sm:$0xff] %v2415_v57  ;;  %v2421_v37 = vpop.f32.mrb[34].mxu1  ;;  %v2423_v5 = vpop.f32.mrb[35].mxu0  ;;  %v2428_v33 = vadd.f32 %v1998_v31, %v560_v50  ;;  %1371 = vst [vmem:[#allocation2 + $0xc8] sm:$0xff] %v1271_v58  ;;  %v1014_v13 = vmul.f32 1.442695, %v880_v45  ;;  %v562_v15 = vmul.f32 %v1994_v29, %v2199_v46 }
 0x11e   :  { %3095 = vst [vmem:[#allocation7_spill] sm:$0xff] %v2421_v37  ;;  %3096 = vst [vmem:[#allocation8_spill] sm:$0xff] %v2423_v5  ;;  %v2430_v62 = vpop.f32.mrb[35].mxu1  ;;  %v1685_v1 = vpop.eup %1684  ;;  %v1012_v40 = vmul.f32 1.442695, %v879_v60  ;;  %v561_v5 = vmul.f32 %v1996_v30, %v2205_v55  ;;  %vm776_vm15 = vcmp.gt.f32.partialorder %v2330_v52, 0.0 }
 0x11f   :  { %v1687_v37 = vpop.eup %1686  ;;  %v1534_v24 = vadd.f32 -1.0, %v1685_v1  ;;  %v1016_v11 = vmul.f32 1.442695, %v881_v63  ;;  %v882_v50 = vmin.f32 %v2428_v33, 0.0  ;;  %1696 = vpow2.f32 %v1014_v13 }
 0x120   :  { %v1689_v23 = vpop.eup %1688  ;;  %v1535_v57 = vadd.f32 -1.0, %v1687_v37  ;;  %v2439_v58 = vadd.f32 %v2002_v34, %v562_v15  ;;  %v2442_v45 = vadd.f32 %v2004_v35, %v561_v5  ;;  %1698 = vpow2.f32 %v1012_v40 }
 0x121   :  { %v1691_v46 = vpop.eup %1690  ;;  %v1273_v55 = vsel %vm773_vm13, %v2321_v54, %v1534_v24  ;;  %v1537_v60 = vadd.f32 -1.0, %v1689_v23  ;;  %v1018_v1 = vmul.f32 1.442695, %v882_v50  ;;  %vm775_vm0 = vcmp.gt.f32.partialorder %v2333_v53, 0.0 }
 0x122   :  { %v2447_v63 = vpop.f32.mrb[36].mxu0  ;;  %1373 = vst [vmem:[#allocation2 + $0xd8] sm:$0xff] %v1273_v55  ;;  %v1274_v37 = vsel %vm774_vm14, %v2324_v38, %v1535_v57  ;;  %v1536_v13 = vadd.f32 -1.0, %v1691_v46  ;;  %1700 = vpow2.f32 %v1016_v11  ;;  %vm777_vm1 = vcmp.gt.f32.partialorder %v2348_v43, 0.0  ;;  %v1693_v57 = vpop.eup %1692 }
 0x123   :  { %v2453_v5 = vpop.f32.mrb[36].mxu1  ;;  %v2455_v15 = vpop.f32.mrb[37].mxu0  ;;  %1374 = vst [vmem:[#allocation2 + $0xe0] sm:$0xff] %v1274_v37  ;;  %v1276_v54 = vsel %vm776_vm15, %v2330_v52, %v1537_v60  ;;  %1702 = vpow2.f32 %v1018_v1  ;;  %v884_v40 = vmin.f32 %v2439_v58, 0.0  ;;  %v883_v50 = vmin.f32 %v2442_v45, 0.0 }
 0x124   :  { %v2462_v24 = vpop.f32.mrb[37].mxu1  ;;  %v2464_v38 = vpop.f32.mrb[38].mxu0  ;;  %1376 = vst [vmem:[#allocation2 + $0xf0] sm:$0xff] %v1276_v54  ;;  %v1275_v11 = vsel %vm775_vm0, %v2333_v53, %v1536_v13  ;;  %v563_v23 = vmul.f32 %v2000_v32, %v2207_v56  ;;  %v564_v52 = vmul.f32 %v1992_v28, %v2235_v6  ;;  %v1538_v60 = vadd.f32 -1.0, %v1693_v57 }
 0x125   :  { %3097 = vst [vmem:[#allocation9_spill] sm:$0xff] %v2462_v24  ;;  %3098 = vst [vmem:[#allocation10_spill] sm:$0xff] %v2464_v38  ;;  %v2472_v46 = vpop.f32.mrb[38].mxu1  ;;  %v2474_v55 = vpop.f32.mrb[39].mxu0  ;;  %v1022_v1 = vmul.f32 1.442695, %v884_v40  ;;  %v566_v37 = vmul.f32 %v1994_v29, %v2243_v7  ;;  %v565_v53 = vmul.f32 %v1996_v30, %v2245_v10  ;;  %v568_v24 = vmul.f32 %v1992_v28, %v2254_v49 }
 0x126   :  { %3099 = vst [vmem:[#allocation11_spill] sm:$0xff] %v2472_v46  ;;  %3100 = vst [vmem:[#allocation12_spill] sm:$0xff] %v2474_v55  ;;  %v2480_v13 = vpop.f32.mrb[39].mxu1  ;;  %v1020_v54 = vmul.f32 1.442695, %v883_v50  ;;  %v2483_v56 = vadd.f32 %v2007_v39, %v563_v23  ;;  %v2486_v6 = vadd.f32 %v1998_v31, %v564_v52  ;;  %v1695_v57 = vpop.eup %1694  ;;  %v1277_v7 = vsel %vm777_vm1, %v2348_v43, %v1538_v60 }
 0x127   :  { %1375 = vst [vmem:[#allocation2 + $0xe8] sm:$0xff] %v1275_v11  ;;  %3101 = vst [vmem:[#allocation13_spill] sm:$0xff] %v2480_v13  ;;  %v567_v11 = vmul.f32 %v2000_v32, %v2252_v19  ;;  %1704 = vpow2.f32 %v1022_v1  ;;  %v2494_v10 = vadd.f32 %v2002_v34, %v566_v37  ;;  %v2497_v40 = vadd.f32 %v2004_v35, %v565_v53 }
 0x128   :  { %1377 = vst [vmem:[#allocation2 + $0xf8] sm:$0xff] %v1277_v7  ;;  %vm778_vm2 = vcmp.gt.f32.partialorder %v2381_v59, 0.0  ;;  %v1539_v50 = vadd.f32 -1.0, %v1695_v57  ;;  %1706 = vpow2.f32 %v1020_v54  ;;  %v885_v23 = vmin.f32 %v2483_v56, 0.0 }
 0x129   :  { %vm780_vm3 = vcmp.gt.f32.partialorder %v2395_v44, 0.0  ;;  %vm779_vm4 = vcmp.gt.f32.partialorder %v2400_v17, 0.0  ;;  %v886_v19 = vmin.f32 %v2486_v6, 0.0  ;;  %v888_v43 = vmin.f32 %v2494_v10, 0.0  ;;  %v1697_v60 = vpop.eup %1696 }
 0x12a   :  { %v2505_v52 = vpop.f32.mrb[40].mxu0  ;;  %v1278_v1 = vsel %vm778_vm2, %v2381_v59, %v1539_v50  ;;  %vm781_vm5 = vcmp.gt.f32.partialorder %v2403_v16, 0.0  ;;  %v1024_v37 = vmul.f32 1.442695, %v885_v23  ;;  %v887_v53 = vmin.f32 %v2497_v40, 0.0  ;;  %v1699_v7 = vpop.eup %1698 }
 0x12b   :  { %3102 = vst [vmem:[#allocation14_spill] sm:$0xff] %v2505_v52  ;;  %v2510_v54 = vpop.f32.mrb[40].mxu1  ;;  %v2512_v57 = vpop.f32.mrb[41].mxu0  ;;  %1378 = vst [vmem:[#allocation2 + $0x100] sm:$0xff] %v1278_v1  ;;  %v1541_v13 = vadd.f32 -1.0, %v1697_v60  ;;  %v2515_v38 = vadd.f32 %v2007_v39, %v567_v11  ;;  %v1540_v50 = vadd.f32 -1.0, %v1699_v7 }
 0x12c   :  { %3103 = vst [vmem:[#allocation15_spill] sm:$0xff] %v2510_v54  ;;  %3104 = vst [vmem:[#allocation16_spill] sm:$0xff] %v2512_v57  ;;  %v1026_v55 = vmul.f32 1.442695, %v886_v19  ;;  %v1030_v46 = vmul.f32 1.442695, %v888_v43  ;;  %v1701_v59 = vpop.eup %1700  ;;  %1708 = vpow2.f32 %v1024_v37 }
 0x12d   :  { %v2517_v52 = vpop.f32.mrb[41].mxu1  ;;  %v1028_v23 = vmul.f32 1.442695, %v887_v53  ;;  %v2521_v54 = vpop.f32.mrb[42].mxu0  ;;  %v1280_v19 = vsel %vm780_vm3, %v2395_v44, %v1541_v13  ;;  %v1542_v11 = vadd.f32 -1.0, %v1701_v59  ;;  %vm782_vm6 = vcmp.gt.f32.partialorder %v2428_v33, 0.0 }
 0x12e   :  { %v2523_v57 = vpop.f32.mrb[42].mxu1  ;;  %v1703_v1 = vpop.eup %1702  ;;  %1710 = vpow2.f32 %v1026_v55  ;;  %1380 = vst [vmem:[#allocation2 + $0x110] sm:$0xff] %v1280_v19  ;;  %v1279_v49 = vsel %vm779_vm4, %v2400_v17, %v1540_v50  ;;  %v889_v53 = vmin.f32 %v2515_v38, 0.0  ;;  %v2541_v55 = vadd.f32 %v1998_v31, %v568_v24 }
 0x12f   :  { %v2529_v43 = vpop.f32.mrb[43].mxu0  ;;  %v2531_v60 = vpop.f32.mrb[43].mxu1  ;;  %v1543_v37 = vadd.f32 -1.0, %v1703_v1  ;;  %1712 = vpow2.f32 %v1030_v46  ;;  %1379 = vst [vmem:[#allocation2 + $0x108] sm:$0xff] %v1279_v49  ;;  %v1281_v44 = vsel %vm781_vm5, %v2403_v16, %v1542_v11  ;;  %v570_v13 = vmul.f32 %v1994_v29, %v2260_v26 }
 0x130   :  { %1714 = vpow2.f32 %v1028_v23  ;;  %1381 = vst [vmem:[#allocation2 + $0x118] sm:$0xff] %v1281_v44  ;;  %v1032_v17 = vmul.f32 1.442695, %v889_v53  ;;  %v569_v46 = vmul.f32 %v1996_v30, %v2262_v9  ;;  %v571_v59 = vmul.f32 %v2000_v32, %v2267_v22 }
 0x131   :  { %v1282_v7 = vsel %vm782_vm6, %v2428_v33, %v1543_v37  ;;  %v1705_v50 = vpop.eup %1704  ;;  %vm784_vm7 = vcmp.gt.f32.partialorder %v2439_v58, 0.0  ;;  %v890_v16 = vmin.f32 %v2541_v55, 0.0  ;;  %v2553_v24 = vadd.f32 %v2002_v34, %v570_v13 }
 0x132   :  { %1382 = vst [vmem:[#allocation2 + $0x120] sm:$0xff] %v1282_v7  ;;  %v572_v26 = vmul.f32 %v1992_v28, %v2283_v12  ;;  %v2557_v33 = vpop.f32.mrb[44].mxu0  ;;  %v1707_v23 = vpop.eup %1706  ;;  %v1545_v1 = vadd.f32 -1.0, %v1705_v50  ;;  %1716 = vpow2.f32 %v1032_v17  ;;  %v2560_v9 = vadd.f32 %v2004_v35, %v569_v46 }
 0x133   :  { %v2563_v22 = vadd.f32 %v2007_v39, %v571_v59  ;;  %v2565_v19 = vpop.f32.mrb[44].mxu1  ;;  %v2567_v11 = vpop.f32.mrb[45].mxu0  ;;  %vm783_vm8 = vcmp.gt.f32.partialorder %v2442_v45, 0.0  ;;  %v1544_v49 = vadd.f32 -1.0, %v1707_v23  ;;  %v1034_v37 = vmul.f32 1.442695, %v890_v16 }
 0x134   :  { %v892_v12 = vmin.f32 %v2553_v24, 0.0  ;;  %v2571_v53 = vpop.f32.mrb[45].mxu1  ;;  %v1284_v44 = vsel %vm784_vm7, %v2439_v58, %v1545_v1  ;;  %vm785_vm9 = vcmp.gt.f32.partialorder %v2483_v56, 0.0  ;;  %vm786_vm10 = vcmp.gt.f32.partialorder %v2486_v6, 0.0  ;;  %v2579_v7 = vpop.f32.mrb[46].mxu0 }
 0x135   :  { %3105 = vst [vmem:[#allocation17_spill] sm:$0xff] %v2571_v53  ;;  %v891_v13 = vmin.f32 %v2560_v9, 0.0  ;;  %v2581_v17 = vpop.f32.mrb[46].mxu1  ;;  %1384 = vst [vmem:[#allocation2 + $0x130] sm:$0xff] %v1284_v44  ;;  %v1283_v46 = vsel %vm783_vm8, %v2442_v45, %v1544_v49  ;;  %1718 = vpow2.f32 %v1034_v37  ;;  %v893_v50 = vmin.f32 %v2563_v22, 0.0  ;;  %v2585_v16 = vpop.f32.mrb[47].mxu0 }
 0x136   :  { %3106 = vst [vmem:[#allocation18_spill] sm:$0xff] %v2581_v17  ;;  %v1038_v59 = vmul.f32 1.442695, %v892_v12  ;;  %3107 = vst [vmem:[#allocation19_spill] sm:$0xff] %v2585_v16  ;;  %v2587_v58 = vpop.f32.mrb[47].mxu1  ;;  %v1709_v23 = vpop.eup %1708  ;;  %v2590_v53 = vadd.f32 %v1998_v31, %v572_v26  ;;  %v574_v17 = vmul.f32 %v1994_v29, %v2290_v20  ;;  %v573_v45 = vmul.f32 %v1996_v30, %v2292_v18 }
 0x137   :  { %3108 = vst [vmem:[#allocation20_spill] sm:$0xff] %v2587_v58  ;;  %1383 = vst [vmem:[#allocation2 + $0x128] sm:$0xff] %v1283_v46  ;;  %v1036_v1 = vmul.f32 1.442695, %v891_v13  ;;  %v1546_v37 = vadd.f32 -1.0, %v1709_v23  ;;  %v575_v44 = vmul.f32 %v2000_v32, %v2298_v27  ;;  %vm788_vm11 = vcmp.gt.f32.partialorder %v2494_v10, 0.0 }
 0x138   :  { %v1711_v49 = vpop.eup %1710  ;;  %1720 = vpow2.f32 %v1038_v59  ;;  %v1040_v12 = vmul.f32 1.442695, %v893_v50  ;;  %v894_v26 = vmin.f32 %v2590_v53, 0.0  ;;  %v2604_v46 = vadd.f32 %v2002_v34, %v574_v17 }
 0x139   :  { %v1713_v58 = vpop.eup %1712  ;;  %v1547_v16 = vadd.f32 -1.0, %v1711_v49  ;;  %1722 = vpow2.f32 %v1036_v1  ;;  %v1285_v20 = vsel %vm785_vm9, %v2483_v56, %v1546_v37  ;;  %v2612_v1 = vadd.f32 %v2004_v35, %v573_v45 }
 0x13a   :  { %v1715_v13 = vpop.eup %1714  ;;  %v1549_v18 = vadd.f32 -1.0, %v1713_v58  ;;  %1724 = vpow2.f32 %v1040_v12  ;;  %v2606_v59 = vpop.f32.mrb[48].mxu0  ;;  %1385 = vst [vmem:[#allocation2 + $0x138] sm:$0xff] %v1285_v20  ;;  %v1042_v23 = vmul.f32 1.442695, %v894_v26  ;;  %vm787_vm12 = vcmp.gt.f32.partialorder %v2497_v40, 0.0 }
 0x13b   :  { %v1286_v27 = vsel %vm786_vm10, %v2486_v6, %v1547_v16  ;;  %v1548_v50 = vadd.f32 -1.0, %v1715_v13  ;;  %v2614_v49 = vpop.f32.mrb[48].mxu1  ;;  %v2616_v56 = vpop.f32.mrb[49].mxu0  ;;  %v896_v58 = vmin.f32 %v2604_v46, 0.0  ;;  %v2624_v6 = vadd.f32 %v2007_v39, %v575_v44 }
 0x13c   :  { %1386 = vst [vmem:[#allocation2 + $0x140] sm:$0xff] %v1286_v27  ;;  %v1288_v17 = vsel %vm788_vm11, %v2494_v10, %v1549_v18  ;;  %v2626_v16 = vpop.f32.mrb[49].mxu1  ;;  %v338_v45 = vpop.f32.mrb[50].mxu0  ;;  %vm789_vm13 = vcmp.gt.f32.partialorder %v2515_v38, 0.0  ;;  %1726 = vpow2.f32 %v1042_v23  ;;  %v895_v26 = vmin.f32 %v2612_v1, 0.0 }
 0x13d   :  { %v1717_v37 = vpop.eup %1716  ;;  %1388 = vst [vmem:[#allocation2 + $0x150] sm:$0xff] %v1288_v17  ;;  %v1287_v12 = vsel %vm787_vm12, %v2497_v40, %v1548_v50  ;;  %v499_v10 = vpop.f32.mrb[50].mxu1  ;;  %vm790_vm14 = vcmp.gt.f32.partialorder %v2541_v55, 0.0  ;;  %v1046_v44 = vmul.f32 1.442695, %v896_v58  ;;  %v897_v18 = vmin.f32 %v2624_v6, 0.0 }
 0x13e   :  { %v339_v13 = vpop.f32.mrb[51].mxu0  ;;  %1387 = vst [vmem:[#allocation2 + $0x148] sm:$0xff] %v1287_v12  ;;  %v1550_v20 = vadd.f32 -1.0, %v1717_v37  ;;  %v500_v27 = vpop.f32.mrb[51].mxu1  ;;  %v1044_v45 = vmul.f32 1.442695, %v895_v26  ;;  %v576_v17 = vmul.f32 %v1992_v28, %v2300_v36  ;;  %v578_v40 = vmul.f32 %v1994_v29, %v2307_v41 }
 0x13f   :  { %v577_v50 = vmul.f32 %v1996_v30, %v2309_v0  ;;  %v1719_v23 = vpop.eup %1718  ;;  %1728 = vpow2.f32 %v1046_v44  ;;  %v1048_v58 = vmul.f32 1.442695, %v897_v18  ;;  %v579_v12 = vmul.f32 %v2000_v32, %v2318_v2 }
 0x140   :  { %v1289_v37 = vsel %vm789_vm13, %v2515_v38, %v1550_v20  ;;  %v1551_v26 = vadd.f32 -1.0, %v1719_v23  ;;  %1730 = vpow2.f32 %v1044_v45  ;;  %v2645_v36 = vadd.f32 %v1998_v31, %v576_v17 }
 0x141   :  { %1389 = vst [vmem:[#allocation2 + $0x158] sm:$0xff] %v1289_v37  ;;  %v2648_v41 = vadd.f32 %v2002_v34, %v578_v40  ;;  %vm792_vm15 = vcmp.gt.f32.partialorder %v2553_v24, 0.0  ;;  %1732 = vpow2.f32 %v1048_v58  ;;  %v2652_v38 = vadd.f32 %v2004_v35, %v577_v50 }
 0x142   :  { %v1721_v0 = vpop.eup %1720  ;;  %v2655_v10 = vadd.f32 %v2007_v39, %v579_v12  ;;  %v1290_v13 = vsel %vm790_vm14, %v2541_v55, %v1551_v26  ;;  %v898_v44 = vmin.f32 %v2645_v36, 0.0  ;;  %v580_v18 = vmul.f32 %v1992_v28, %v2344_v25 }
 0x143   :  { %v1723_v2 = vpop.eup %1722  ;;  %v1553_v20 = vadd.f32 -1.0, %v1721_v0  ;;  %1390 = vst [vmem:[#allocation2 + $0x160] sm:$0xff] %v1290_v13  ;;  %vm791_vm0 = vcmp.gt.f32.partialorder %v2560_v9, 0.0  ;;  %vm793_vm1 = vcmp.gt.f32.partialorder %v2563_v22, 0.0  ;;  %v900_v17 = vmin.f32 %v2648_v41, 0.0 }
 0x144   :  { %v1725_v27 = vpop.eup %1724  ;;  %v1552_v45 = vadd.f32 -1.0, %v1723_v2  ;;  %v1050_v23 = vmul.f32 1.442695, %v898_v44  ;;  %v899_v55 = vmin.f32 %v2652_v38, 0.0  ;;  %vm794_vm2 = vcmp.gt.f32.partialorder %v2590_v53, 0.0  ;;  %v3109_v44 = vld [vmem:[#allocation5_spill] sm:$0xff] }
 0x145   :  { %v1292_v40 = vsel %vm792_vm15, %v2553_v24, %v1553_v20  ;;  %v1554_v50 = vadd.f32 -1.0, %v1725_v27  ;;  %v1054_v25 = vmul.f32 1.442695, %v900_v17  ;;  %v901_v58 = vmin.f32 %v2655_v10, 0.0 }
 0x146   :  { %1392 = vst [vmem:[#allocation2 + $0x170] sm:$0xff] %v1292_v40  ;;  %v1291_v37 = vsel %vm791_vm0, %v2560_v9, %v1552_v45  ;;  %v1727_v12 = vpop.eup %1726  ;;  %1734 = vpow2.f32 %v1050_v23  ;;  %v1052_v0 = vmul.f32 1.442695, %v899_v55  ;;  %v2673_v24 = vadd.f32 %v1998_v31, %v580_v18 }
 0x147   :  { %1391 = vst [vmem:[#allocation2 + $0x168] sm:$0xff] %v1291_v37  ;;  %v1293_v26 = vsel %vm793_vm1, %v2563_v22, %v1554_v50  ;;  %v1555_v2 = vadd.f32 -1.0, %v1727_v12  ;;  %1736 = vpow2.f32 %v1054_v25  ;;  %v1056_v13 = vmul.f32 1.442695, %v901_v58 }
 0x148   :  { %1393 = vst [vmem:[#allocation2 + $0x178] sm:$0xff] %v1293_v26  ;;  %v582_v9 = vmul.f32 %v1994_v29, %v2350_v14  ;;  %vm796_vm3 = vcmp.gt.f32.partialorder %v2604_v46, 0.0  ;;  %1738 = vpow2.f32 %v1052_v0  ;;  %v902_v20 = vmin.f32 %v2673_v24, 0.0 }
 0x149   :  { %v581_v22 = vmul.f32 %v1996_v30, %v3109_v44  ;;  %v1729_v27 = vpop.eup %1728  ;;  %v1294_v18 = vsel %vm794_vm2, %v2590_v53, %v1555_v2  ;;  %1740 = vpow2.f32 %v1056_v13  ;;  %v583_v14 = vmul.f32 %v2000_v32, %v2356_v3 }
 0x14a   :  { %v2685_v45 = vadd.f32 %v2002_v34, %v582_v9  ;;  %v1731_v17 = vpop.eup %1730  ;;  %1394 = vst [vmem:[#allocation2 + $0x180] sm:$0xff] %v1294_v18  ;;  %v1557_v40 = vadd.f32 -1.0, %v1729_v27  ;;  %v1058_v50 = vmul.f32 1.442695, %v902_v20  ;;  %v584_v55 = vmul.f32 %v1992_v28, %v2361_v42 }
 0x14b   :  { %v2690_v23 = vadd.f32 %v2004_v35, %v581_v22  ;;  %v1733_v37 = vpop.eup %1732  ;;  %vm795_vm4 = vcmp.gt.f32.partialorder %v2612_v1, 0.0  ;;  %v1556_v53 = vadd.f32 -1.0, %v1731_v17  ;;  %v2697_v58 = vadd.f32 %v2007_v39, %v583_v14 }
 0x14c   :  { %v904_v25 = vmin.f32 %v2685_v45, 0.0  ;;  %v1296_v3 = vsel %vm796_vm3, %v2604_v46, %v1557_v40  ;;  %vm797_vm5 = vcmp.gt.f32.partialorder %v2624_v6, 0.0  ;;  %v1558_v12 = vadd.f32 -1.0, %v1733_v37 }
 0x14d   :  { %1742 = vpow2.f32 %v1058_v50  ;;  %1396 = vst [vmem:[#allocation2 + $0x190] sm:$0xff] %v1296_v3  ;;  %v1295_v42 = vsel %vm795_vm4, %v2612_v1, %v1556_v53  ;;  %vm798_vm6 = vcmp.gt.f32.partialorder %v2645_v36, 0.0  ;;  %v903_v0 = vmin.f32 %v2690_v23, 0.0 }
 0x14e   :  { %v1062_v26 = vmul.f32 1.442695, %v904_v25  ;;  %1395 = vst [vmem:[#allocation2 + $0x188] sm:$0xff] %v1295_v42  ;;  %v1297_v2 = vsel %vm797_vm5, %v2624_v6, %v1558_v12  ;;  %v905_v13 = vmin.f32 %v2697_v58, 0.0  ;;  %v2709_v9 = vadd.f32 %v1998_v31, %v584_v55 }
 0x14f   :  { %v586_v46 = vmul.f32 %v1994_v29, %v2363_v51  ;;  %1397 = vst [vmem:[#allocation2 + $0x198] sm:$0xff] %v1297_v2  ;;  %v1060_v20 = vmul.f32 1.442695, %v903_v0  ;;  %v585_v1 = vmul.f32 %v1996_v30, %v2369_v47  ;;  %v587_v44 = vmul.f32 %v2000_v32, %v2371_v48 }
 0x150   :  { %1744 = vpow2.f32 %v1062_v26  ;;  %v1735_v22 = vpop.eup %1734  ;;  %vm800_vm7 = vcmp.gt.f32.partialorder %v2648_v41, 0.0  ;;  %v1064_v6 = vmul.f32 1.442695, %v905_v13  ;;  %v906_v27 = vmin.f32 %v2709_v9, 0.0 }
 0x151   :  { %v2720_v18 = vadd.f32 %v2002_v34, %v586_v46  ;;  %v1737_v14 = vpop.eup %1736  ;;  %v1559_v51 = vadd.f32 -1.0, %v1735_v22  ;;  %1746 = vpow2.f32 %v1060_v20  ;;  %v2723_v17 = vadd.f32 %v2004_v35, %v585_v1 }
 0x152   :  { %v2726_v47 = vadd.f32 %v2007_v39, %v587_v44  ;;  %v1739_v40 = vpop.eup %1738  ;;  %v1561_v48 = vadd.f32 -1.0, %v1737_v14  ;;  %vm799_vm8 = vcmp.gt.f32.partialorder %v2652_v38, 0.0  ;;  %1748 = vpow2.f32 %v1064_v6 }
 0x153   :  { %v1066_v50 = vmul.f32 1.442695, %v906_v27  ;;  %v1741_v55 = vpop.eup %1740  ;;  %v1298_v37 = vsel %vm798_vm6, %v2645_v36, %v1559_v51  ;;  %v1560_v53 = vadd.f32 -1.0, %v1739_v40  ;;  %vm801_vm9 = vcmp.gt.f32.partialorder %v2655_v10, 0.0 }
 0x154   :  { %v908_v25 = vmin.f32 %v2720_v18, 0.0  ;;  %1398 = vst [vmem:[#allocation2 + $0x1a0] sm:$0xff] %v1298_v37  ;;  %v1300_v3 = vsel %vm800_vm7, %v2648_v41, %v1561_v48  ;;  %v1562_v12 = vadd.f32 -1.0, %v1741_v55  ;;  %v907_v42 = vmin.f32 %v2723_v17, 0.0 }
 0x155   :  { %1750 = vpow2.f32 %v1066_v50  ;;  %1400 = vst [vmem:[#allocation2 + $0x1b0] sm:$0xff] %v1300_v3  ;;  %v1299_v26 = vsel %vm799_vm8, %v2652_v38, %v1560_v53  ;;  %vm802_vm10 = vcmp.gt.f32.partialorder %v2673_v24, 0.0  ;;  %v909_v0 = vmin.f32 %v2726_v47, 0.0 }
 0x156   :  { %v1070_v36 = vmul.f32 1.442695, %v908_v25  ;;  %1399 = vst [vmem:[#allocation2 + $0x1a8] sm:$0xff] %v1299_v26  ;;  %v1301_v13 = vsel %vm801_vm9, %v2655_v10, %v1562_v12  ;;  %v1068_v46 = vmul.f32 1.442695, %v907_v42  ;;  %v588_v41 = vmul.f32 %v1992_v28, %v2397_v4 }
 0x157   :  { %v1743_v2 = vpop.eup %1742  ;;  %v590_v20 = vmul.f32 %v1994_v29, %v2407_v61  ;;  %1401 = vst [vmem:[#allocation2 + $0x1b8] sm:$0xff] %v1301_v13  ;;  %v1072_v38 = vmul.f32 1.442695, %v909_v0  ;;  %v589_v44 = vmul.f32 %v1996_v30, %v2409_v8  ;;  %v591_v4 = vmul.f32 %v2000_v32, %v2413_v21  ;;  %v3110_v8 = vld [vmem:[#allocation6_spill] sm:$0xff] }
 0x158   :  { %v1563_v1 = vadd.f32 -1.0, %v1743_v2  ;;  %1752 = vpow2.f32 %v1070_v36  ;;  %v2749_v22 = vadd.f32 %v1998_v31, %v588_v41  ;;  %v592_v14 = vmul.f32 %v1992_v28, %v3110_v8 }
 0x159   :  { %1754 = vpow2.f32 %v1068_v46  ;;  %v2752_v10 = vadd.f32 %v2002_v34, %v590_v20  ;;  %v2760_v27 = vadd.f32 %v2004_v35, %v589_v44  ;;  %vm804_vm11 = vcmp.gt.f32.partialorder %v2685_v45, 0.0  ;;  %v3111_v20 = vld [vmem:[#allocation7_spill] sm:$0xff] }
 0x15a   :  { %v1745_v6 = vpop.eup %1744  ;;  %v1302_v61 = vsel %vm802_vm10, %v2673_v24, %v1563_v1  ;;  %1756 = vpow2.f32 %v1072_v38  ;;  %vm803_vm12 = vcmp.gt.f32.partialorder %v2690_v23, 0.0  ;;  %v910_v21 = vmin.f32 %v2749_v22, 0.0  ;;  %v3112_v1 = vld [vmem:[#allocation8_spill] sm:$0xff] }
 0x15b   :  { %1402 = vst [vmem:[#allocation2 + $0x1c0] sm:$0xff] %v1302_v61  ;;  %v1565_v51 = vadd.f32 -1.0, %v1745_v6  ;;  %v1747_v40 = vpop.eup %1746  ;;  %vm805_vm13 = vcmp.gt.f32.partialorder %v2697_v58, 0.0  ;;  %v912_v24 = vmin.f32 %v2752_v10, 0.0  ;;  %v911_v48 = vmin.f32 %v2760_v27, 0.0 }
 0x15c   :  { %v2771_v50 = vadd.f32 %v2007_v39, %v591_v4  ;;  %v1749_v55 = vpop.eup %1748  ;;  %v1564_v53 = vadd.f32 -1.0, %v1747_v40  ;;  %v1074_v25 = vmul.f32 1.442695, %v910_v21  ;;  %v2775_v3 = vadd.f32 %v1998_v31, %v592_v14 }
 0x15d   :  { %v1304_v37 = vsel %vm804_vm11, %v2685_v45, %v1565_v51  ;;  %v1566_v12 = vadd.f32 -1.0, %v1749_v55  ;;  %vm806_vm14 = vcmp.gt.f32.partialorder %v2709_v9, 0.0  ;;  %v1078_v42 = vmul.f32 1.442695, %v912_v24 }
 0x15e   :  { %1404 = vst [vmem:[#allocation2 + $0x1d0] sm:$0xff] %v1304_v37  ;;  %v1076_v26 = vmul.f32 1.442695, %v911_v48  ;;  %v1303_v0 = vsel %vm803_vm12, %v2690_v23, %v1564_v53  ;;  %vm808_vm15 = vcmp.gt.f32.partialorder %v2720_v18, 0.0  ;;  %1758 = vpow2.f32 %v1074_v25 }
 0x15f   :  { %v1751_v36 = vpop.eup %1750  ;;  %v913_v45 = vmin.f32 %v2771_v50, 0.0  ;;  %1403 = vst [vmem:[#allocation2 + $0x1c8] sm:$0xff] %v1303_v0  ;;  %v1305_v2 = vsel %vm805_vm13, %v2697_v58, %v1566_v12  ;;  %1760 = vpow2.f32 %v1078_v42  ;;  %v914_v46 = vmin.f32 %v2775_v3, 0.0 }
 0x160   :  { %v1567_v13 = vadd.f32 -1.0, %v1751_v36  ;;  %1405 = vst [vmem:[#allocation2 + $0x1d8] sm:$0xff] %v1305_v2  ;;  %1762 = vpow2.f32 %v1076_v26  ;;  %v594_v23 = vmul.f32 %v1994_v29, %v3111_v20  ;;  %v593_v38 = vmul.f32 %v1996_v30, %v3112_v1  ;;  %v3113_v2 = vld [vmem:[#allocation9_spill] sm:$0xff] }
 0x161   :  { %v1080_v41 = vmul.f32 1.442695, %v913_v45  ;;  %v1082_v6 = vmul.f32 1.442695, %v914_v46  ;;  %v595_v58 = vmul.f32 %v2000_v32, %v2430_v62  ;;  %v596_v61 = vmul.f32 %v1992_v28, %v2447_v63 }
 0x162   :  { %v1753_v44 = vpop.eup %1752  ;;  %v1306_v4 = vsel %vm806_vm14, %v2709_v9, %v1567_v13  ;;  %v2799_v51 = vadd.f32 %v2002_v34, %v594_v23  ;;  %v2802_v21 = vadd.f32 %v2004_v35, %v593_v38  ;;  %vm807_vm0 = vcmp.gt.f32.partialorder %v2723_v17, 0.0  ;;  %v3114_v13 = vld [vmem:[#allocation10_spill] sm:$0xff] }
 0x163   :  { %v1755_v8 = vpop.eup %1754  ;;  %1406 = vst [vmem:[#allocation2 + $0x1e0] sm:$0xff] %v1306_v4  ;;  %v1569_v14 = vadd.f32 -1.0, %v1753_v44  ;;  %1764 = vpow2.f32 %v1080_v41  ;;  %v2805_v9 = vadd.f32 %v2007_v39, %v595_v58  ;;  %v2808_v62 = vadd.f32 %v1998_v31, %v596_v61 }
 0x164   :  { %v1757_v40 = vpop.eup %1756  ;;  %v1568_v24 = vadd.f32 -1.0, %v1755_v8  ;;  %1766 = vpow2.f32 %v1082_v6  ;;  %v916_v55 = vmin.f32 %v2799_v51, 0.0  ;;  %vm809_vm1 = vcmp.gt.f32.partialorder %v2726_v47, 0.0 }
 0x165   :  { %v1308_v63 = vsel %vm808_vm15, %v2720_v18, %v1569_v14  ;;  %v1570_v48 = vadd.f32 -1.0, %v1757_v40  ;;  %vm810_vm2 = vcmp.gt.f32.partialorder %v2749_v22, 0.0  ;;  %v915_v53 = vmin.f32 %v2802_v21, 0.0 }
 0x166   :  { %1408 = vst [vmem:[#allocation2 + $0x1f0] sm:$0xff] %v1308_v63  ;;  %v1307_v37 = vsel %vm807_vm0, %v2723_v17, %v1568_v24  ;;  %vm812_vm3 = vcmp.gt.f32.partialorder %v2752_v10, 0.0  ;;  %v1086_v18 = vmul.f32 1.442695, %v916_v55  ;;  %v917_v12 = vmin.f32 %v2805_v9, 0.0 }
 0x167   :  { %1407 = vst [vmem:[#allocation2 + $0x1e8] sm:$0xff] %v1307_v37  ;;  %v1309_v25 = vsel %vm809_vm1, %v2726_v47, %v1570_v48  ;;  %v1084_v42 = vmul.f32 1.442695, %v915_v53  ;;  %v918_v26 = vmin.f32 %v2808_v62, 0.0  ;;  %v598_v17 = vmul.f32 %v1994_v29, %v2453_v5 }
 0x168   :  { %1409 = vst [vmem:[#allocation2 + $0x1f8] sm:$0xff] %v1309_v25  ;;  %v597_v36 = vmul.f32 %v1996_v30, %v2455_v15  ;;  %v1759_v0 = vpop.eup %1758  ;;  %1768 = vpow2.f32 %v1086_v18  ;;  %v1088_v45 = vmul.f32 1.442695, %v917_v12  ;;  %v599_v47 = vmul.f32 %v2000_v32, %v3113_v2  ;;  %v3115_v18 = vld [vmem:[#allocation11_spill] sm:$0xff] }
 0x169   :  { %v600_v46 = vmul.f32 %v1992_v28, %v3114_v13  ;;  %v1761_v41 = vpop.eup %1760  ;;  %v1571_v20 = vadd.f32 -1.0, %v1759_v0  ;;  %1770 = vpow2.f32 %v1084_v42  ;;  %v1090_v23 = vmul.f32 1.442695, %v918_v26  ;;  %v3116_v42 = vld [vmem:[#allocation12_spill] sm:$0xff]  ;;  %v3117_v0 = vld [vmem:[#allocation13_spill] sm:$0xff] }
 0x16a   :  { %v2832_v1 = vadd.f32 %v2002_v34, %v598_v17  ;;  %v1763_v5 = vpop.eup %1762  ;;  %v1573_v38 = vadd.f32 -1.0, %v1761_v41  ;;  %1772 = vpow2.f32 %v1088_v45  ;;  %v2835_v15 = vadd.f32 %v2004_v35, %v597_v36 }
 0x16b   :  { %v2838_v44 = vadd.f32 %v2007_v39, %v599_v47  ;;  %v1310_v4 = vsel %vm810_vm2, %v2749_v22, %v1571_v20  ;;  %vm811_vm4 = vcmp.gt.f32.partialorder %v2760_v27, 0.0  ;;  %v1572_v6 = vadd.f32 -1.0, %v1763_v5  ;;  %v3118_v47 = vld [vmem:[#allocation14_spill] sm:$0xff] }
 0x16c   :  { %1774 = vpow2.f32 %v1090_v23  ;;  %1410 = vst [vmem:[#allocation2 + $0x200] sm:$0xff] %v1310_v4  ;;  %v1312_v61 = vsel %vm812_vm3, %v2752_v10, %v1573_v38  ;;  %vm813_vm5 = vcmp.gt.f32.partialorder %v2771_v50, 0.0  ;;  %v920_v8 = vmin.f32 %v2832_v1, 0.0  ;;  %v3119_v23 = vld [vmem:[#allocation15_spill] sm:$0xff] }
 0x16d   :  { %v1765_v58 = vpop.eup %1764  ;;  %v919_v14 = vmin.f32 %v2835_v15, 0.0  ;;  %1412 = vst [vmem:[#allocation2 + $0x210] sm:$0xff] %v1312_v61  ;;  %v1311_v22 = vsel %vm811_vm4, %v2760_v27, %v1572_v6  ;;  %vm814_vm6 = vcmp.gt.f32.partialorder %v2775_v3, 0.0  ;;  %v921_v63 = vmin.f32 %v2838_v44, 0.0 }
 0x16e   :  { %v1767_v40 = vpop.eup %1766  ;;  %v1574_v24 = vadd.f32 -1.0, %v1765_v58  ;;  %1411 = vst [vmem:[#allocation2 + $0x208] sm:$0xff] %v1311_v22  ;;  %v1094_v55 = vmul.f32 1.442695, %v920_v8  ;;  %v2854_v10 = vadd.f32 %v1998_v31, %v600_v46  ;;  %v602_v12 = vmul.f32 %v1994_v29, %v3115_v18  ;;  %v3120_v18 = vld [vmem:[#allocation16_spill] sm:$0xff] }
 0x16f   :  { %v1575_v48 = vadd.f32 -1.0, %v1767_v40  ;;  %v1092_v37 = vmul.f32 1.442695, %v919_v14  ;;  %v1096_v25 = vmul.f32 1.442695, %v921_v63  ;;  %v601_v27 = vmul.f32 %v1996_v30, %v3116_v42 }
 0x170   :  { %v1313_v53 = vsel %vm813_vm5, %v2771_v50, %v1574_v24  ;;  %vm816_vm7 = vcmp.gt.f32.partialorder %v2799_v51, 0.0  ;;  %1776 = vpow2.f32 %v1094_v55  ;;  %v922_v17 = vmin.f32 %v2854_v10, 0.0 }
 0x171   :  { %1413 = vst [vmem:[#allocation2 + $0x218] sm:$0xff] %v1313_v53  ;;  %v1314_v26 = vsel %vm814_vm6, %v2775_v3, %v1575_v48  ;;  %1778 = vpow2.f32 %v1092_v37  ;;  %v2865_v36 = vadd.f32 %v2002_v34, %v602_v12  ;;  %v2868_v50 = vadd.f32 %v2004_v35, %v601_v27 }
 0x172   :  { %1414 = vst [vmem:[#allocation2 + $0x220] sm:$0xff] %v1314_v26  ;;  %v603_v45 = vmul.f32 %v2000_v32, %v3117_v0  ;;  %v1769_v2 = vpop.eup %1768  ;;  %vm815_vm8 = vcmp.gt.f32.partialorder %v2802_v21, 0.0  ;;  %1780 = vpow2.f32 %v1096_v25  ;;  %v1098_v3 = vmul.f32 1.442695, %v922_v17 }
 0x173   :  { %v604_v13 = vmul.f32 %v1992_v28, %v3118_v47  ;;  %v1771_v46 = vpop.eup %1770  ;;  %v1577_v41 = vadd.f32 -1.0, %v1769_v2  ;;  %vm817_vm9 = vcmp.gt.f32.partialorder %v2805_v9, 0.0  ;;  %v924_v20 = vmin.f32 %v2865_v36, 0.0 }
 0x174   :  { %v606_v5 = vmul.f32 %v1994_v29, %v3119_v23  ;;  %v1773_v38 = vpop.eup %1772  ;;  %v1576_v4 = vadd.f32 -1.0, %v1771_v46  ;;  %1782 = vpow2.f32 %v1098_v3  ;;  %v923_v6 = vmin.f32 %v2868_v50, 0.0 }
 0x175   :  { %v2881_v58 = vadd.f32 %v2007_v39, %v603_v45  ;;  %v1316_v8 = vsel %vm816_vm7, %v2799_v51, %v1577_v41  ;;  %v1578_v14 = vadd.f32 -1.0, %v1773_v38  ;;  %v1102_v40 = vmul.f32 1.442695, %v924_v20 }
 0x176   :  { %v1775_v61 = vpop.eup %1774  ;;  %v2887_v22 = vadd.f32 %v1998_v31, %v604_v13  ;;  %1416 = vst [vmem:[#allocation2 + $0x230] sm:$0xff] %v1316_v8  ;;  %v1315_v24 = vsel %vm815_vm8, %v2802_v21, %v1576_v4  ;;  %vm818_vm10 = vcmp.gt.f32.partialorder %v2808_v62, 0.0  ;;  %v1100_v48 = vmul.f32 1.442695, %v923_v6 }
 0x177   :  { %v1579_v63 = vadd.f32 -1.0, %v1775_v61  ;;  %1415 = vst [vmem:[#allocation2 + $0x228] sm:$0xff] %v1315_v24  ;;  %v1317_v55 = vsel %vm817_vm9, %v2805_v9, %v1578_v14  ;;  %vm820_vm11 = vcmp.gt.f32.partialorder %v2832_v1, 0.0  ;;  %1784 = vpow2.f32 %v1102_v40 }
 0x178   :  { %v925_v51 = vmin.f32 %v2881_v58, 0.0  ;;  %1417 = vst [vmem:[#allocation2 + $0x238] sm:$0xff] %v1317_v55  ;;  %1786 = vpow2.f32 %v1100_v48  ;;  %v926_v21 = vmin.f32 %v2887_v22, 0.0  ;;  %v2901_v53 = vadd.f32 %v2002_v34, %v606_v5 }
 0x179   :  { %v1318_v37 = vsel %vm818_vm10, %v2808_v62, %v1579_v63  ;;  %v605_v12 = vmul.f32 %v1996_v30, %v3120_v18  ;;  %v607_v9 = vmul.f32 %v2000_v32, %v2517_v52  ;;  %v608_v42 = vmul.f32 %v1992_v28, %v2521_v54 }
 0x17a   :  { %1418 = vst [vmem:[#allocation2 + $0x240] sm:$0xff] %v1318_v37  ;;  %v1104_v25 = vmul.f32 1.442695, %v925_v51  ;;  %v1777_v27 = vpop.eup %1776  ;;  %vm819_vm12 = vcmp.gt.f32.partialorder %v2835_v15, 0.0  ;;  %v1106_v62 = vmul.f32 1.442695, %v926_v21  ;;  %v610_v17 = vmul.f32 %v1994_v29, %v2523_v57 }
 0x17b   :  { %v928_v26 = vmin.f32 %v2901_v53, 0.0  ;;  %v1779_v0 = vpop.eup %1778  ;;  %v1581_v45 = vadd.f32 -1.0, %v1777_v27  ;;  %v2914_v2 = vadd.f32 %v2004_v35, %v605_v12  ;;  %v2917_v52 = vadd.f32 %v2007_v39, %v607_v9 }
 0x17c   :  { %1788 = vpow2.f32 %v1104_v25  ;;  %v1781_v3 = vpop.eup %1780  ;;  %v1580_v54 = vadd.f32 -1.0, %v1779_v0  ;;  %v2920_v13 = vadd.f32 %v1998_v31, %v608_v42  ;;  %vm821_vm13 = vcmp.gt.f32.partialorder %v2838_v44, 0.0 }
 0x17d   :  { %1790 = vpow2.f32 %v1106_v62  ;;  %v1110_v47 = vmul.f32 1.442695, %v928_v26  ;;  %v1320_v57 = vsel %vm820_vm11, %v2832_v1, %v1581_v45  ;;  %v1582_v46 = vadd.f32 -1.0, %v1781_v3 }
 0x17e   :  { %v927_v41 = vmin.f32 %v2914_v2, 0.0  ;;  %v1783_v20 = vpop.eup %1782  ;;  %1420 = vst [vmem:[#allocation2 + $0x250] sm:$0xff] %v1320_v57  ;;  %v1319_v23 = vsel %vm819_vm12, %v2835_v15, %v1580_v54  ;;  %vm822_vm14 = vcmp.gt.f32.partialorder %v2854_v10, 0.0  ;;  %v929_v5 = vmin.f32 %v2917_v52, 0.0 }
 0x17f   :  { %1792 = vpow2.f32 %v1110_v47  ;;  %1419 = vst [vmem:[#allocation2 + $0x248] sm:$0xff] %v1319_v23  ;;  %v1321_v38 = vsel %vm821_vm13, %v2838_v44, %v1582_v46  ;;  %v1583_v1 = vadd.f32 -1.0, %v1783_v20  ;;  %vm824_vm15 = vcmp.gt.f32.partialorder %v2865_v36, 0.0  ;;  %v3121_v20 = vld [vmem:[#allocation17_spill] sm:$0xff] }
 0x180   :  { %v1108_v4 = vmul.f32 1.442695, %v927_v41  ;;  %1421 = vst [vmem:[#allocation2 + $0x258] sm:$0xff] %v1321_v38  ;;  %v1112_v6 = vmul.f32 1.442695, %v929_v5  ;;  %v930_v61 = vmin.f32 %v2920_v13, 0.0  ;;  %v2936_v8 = vadd.f32 %v2002_v34, %v610_v17 }
 0x181   :  { %v609_v15 = vmul.f32 %v1996_v30, %v2529_v43  ;;  %v1785_v14 = vpop.eup %1784  ;;  %v1322_v40 = vsel %vm822_vm14, %v2854_v10, %v1583_v1  ;;  %v611_v44 = vmul.f32 %v2000_v32, %v2531_v60  ;;  %v612_v24 = vmul.f32 %v1992_v28, %v2557_v33 }
 0x182   :  { %1794 = vpow2.f32 %v1108_v4  ;;  %v1787_v63 = vpop.eup %1786  ;;  %1422 = vst [vmem:[#allocation2 + $0x260] sm:$0xff] %v1322_v40  ;;  %v1585_v48 = vadd.f32 -1.0, %v1785_v14  ;;  %vm823_vm0 = vcmp.gt.f32.partialorder %v2868_v50, 0.0  ;;  %v1114_v55 = vmul.f32 1.442695, %v930_v61 }
 0x183   :  { %1796 = vpow2.f32 %v1112_v6  ;;  %v1584_v51 = vadd.f32 -1.0, %v1787_v63  ;;  %v932_v43 = vmin.f32 %v2936_v8, 0.0  ;;  %v2948_v37 = vadd.f32 %v2004_v35, %v609_v15  ;;  %v3122_v15 = vld [vmem:[#allocation18_spill] sm:$0xff] }
 0x184   :  { %v2951_v10 = vadd.f32 %v2007_v39, %v611_v44  ;;  %v1324_v60 = vsel %vm824_vm15, %v2865_v36, %v1585_v48  ;;  %1798 = vpow2.f32 %v1114_v55  ;;  %v2957_v33 = vadd.f32 %v1998_v31, %v612_v24  ;;  %v3123_v24 = vld [vmem:[#allocation19_spill] sm:$0xff] }
 0x185   :  { %v614_v21 = vmul.f32 %v1994_v29, %v2565_v19  ;;  %1424 = vst [vmem:[#allocation2 + $0x270] sm:$0xff] %v1324_v60  ;;  %v1323_v18 = vsel %vm823_vm0, %v2868_v50, %v1584_v51  ;;  %vm825_vm1 = vcmp.gt.f32.partialorder %v2881_v58, 0.0  ;;  %v1118_v12 = vmul.f32 1.442695, %v932_v43 }
 0x186   :  { %v1789_v25 = vpop.eup %1788  ;;  %v931_v9 = vmin.f32 %v2948_v37, 0.0  ;;  %1423 = vst [vmem:[#allocation2 + $0x268] sm:$0xff] %v1323_v18  ;;  %vm826_vm2 = vcmp.gt.f32.partialorder %v2887_v22, 0.0  ;;  %vm828_vm3 = vcmp.gt.f32.partialorder %v2901_v53, 0.0  ;;  %v933_v36 = vmin.f32 %v2951_v10, 0.0  ;;  %v3124_v18 = vld [vmem:[#allocation20_spill] sm:$0xff] }
 0x187   :  { %v1791_v42 = vpop.eup %1790  ;;  %v1586_v27 = vadd.f32 -1.0, %v1789_v25  ;;  %1800 = vpow2.f32 %v1118_v12  ;;  %v934_v26 = vmin.f32 %v2957_v33, 0.0  ;;  %v2970_v45 = vadd.f32 %v2002_v34, %v614_v21 }
 0x188   :  { %v1587_v62 = vadd.f32 -1.0, %v1791_v42  ;;  %v1116_v19 = vmul.f32 1.442695, %v931_v9  ;;  %v1120_v0 = vmul.f32 1.442695, %v933_v36  ;;  %v613_v3 = vmul.f32 %v1996_v30, %v2567_v11 }
 0x189   :  { %v1793_v50 = vpop.eup %1792  ;;  %v1325_v17 = vsel %vm825_vm1, %v2881_v58, %v1586_v27  ;;  %v1122_v57 = vmul.f32 1.442695, %v934_v26  ;;  %vm827_vm4 = vcmp.gt.f32.partialorder %v2914_v2, 0.0  ;;  %v936_v46 = vmin.f32 %v2970_v45, 0.0 }
 0x18a   :  { %1425 = vst [vmem:[#allocation2 + $0x278] sm:$0xff] %v1325_v17  ;;  %v1326_v54 = vsel %vm826_vm2, %v2887_v22, %v1587_v62  ;;  %v1589_v47 = vadd.f32 -1.0, %v1793_v50  ;;  %1802 = vpow2.f32 %v1116_v19  ;;  %v2978_v58 = vadd.f32 %v2004_v35, %v613_v3 }
 0x18b   :  { %1426 = vst [vmem:[#allocation2 + $0x280] sm:$0xff] %v1326_v54  ;;  %1804 = vpow2.f32 %v1120_v0  ;;  %v615_v22 = vmul.f32 %v2000_v32, %v3121_v20  ;;  %v616_v23 = vmul.f32 %v1992_v28, %v2579_v7  ;;  %vm829_vm5 = vcmp.gt.f32.partialorder %v2917_v52, 0.0 }
 0x18c   :  { %v1795_v41 = vpop.eup %1794  ;;  %v1328_v11 = vsel %vm828_vm3, %v2901_v53, %v1589_v47  ;;  %1806 = vpow2.f32 %v1122_v57  ;;  %v1126_v1 = vmul.f32 1.442695, %v936_v46  ;;  %v935_v4 = vmin.f32 %v2978_v58, 0.0 }
 0x18d   :  { %v1797_v5 = vpop.eup %1796  ;;  %1428 = vst [vmem:[#allocation2 + $0x290] sm:$0xff] %v1328_v11  ;;  %v1588_v38 = vadd.f32 -1.0, %v1795_v41  ;;  %v2990_v61 = vadd.f32 %v2007_v39, %v615_v22  ;;  %v2993_v53 = vadd.f32 %v1998_v31, %v616_v23  ;;  %v618_v14 = vmul.f32 %v1994_v29, %v3122_v15 }
 0x18e   :  { %v1590_v6 = vadd.f32 -1.0, %v1797_v5  ;;  %v1799_v40 = vpop.eup %1798  ;;  %1808 = vpow2.f32 %v1126_v1  ;;  %v1124_v44 = vmul.f32 1.442695, %v935_v4  ;;  %v617_v63 = vmul.f32 %v1996_v30, %v3123_v24 }
 0x18f   :  { %v1327_v7 = vsel %vm827_vm4, %v2914_v2, %v1588_v38  ;;  %vm830_vm6 = vcmp.gt.f32.partialorder %v2920_v13, 0.0  ;;  %v1591_v55 = vadd.f32 -1.0, %v1799_v40  ;;  %v937_v51 = vmin.f32 %v2990_v61, 0.0 }
 0x190   :  { %1427 = vst [vmem:[#allocation2 + $0x288] sm:$0xff] %v1327_v7  ;;  %v1329_v48 = vsel %vm829_vm5, %v2917_v52, %v1590_v6  ;;  %vm832_vm7 = vcmp.gt.f32.partialorder %v2936_v8, 0.0  ;;  %1810 = vpow2.f32 %v1124_v44  ;;  %v938_v43 = vmin.f32 %v2993_v53, 0.0 }
 0x191   :  { %1429 = vst [vmem:[#allocation2 + $0x298] sm:$0xff] %v1329_v48  ;;  %v3008_v2 = vadd.f32 %v2002_v34, %v618_v14  ;;  %v1801_v60 = vpop.eup %1800  ;;  %v1330_v21 = vsel %vm830_vm6, %v2920_v13, %v1591_v55  ;;  %v1128_v25 = vmul.f32 1.442695, %v937_v51  ;;  %v3012_v52 = vadd.f32 %v2004_v35, %v617_v63 }
 0x192   :  { %v619_v12 = vmul.f32 %v2000_v32, %v3124_v18  ;;  %1430 = vst [vmem:[#allocation2 + $0x2a0] sm:$0xff] %v1330_v21  ;;  %v1593_v9 = vadd.f32 -1.0, %v1801_v60  ;;  %vm831_vm8 = vcmp.gt.f32.partialorder %v2948_v37, 0.0  ;;  %v1130_v42 = vmul.f32 1.442695, %v938_v43 }
 0x193   :  { %v940_v27 = vmin.f32 %v3008_v2, 0.0  ;;  %vm833_vm9 = vcmp.gt.f32.partialorder %v2951_v10, 0.0  ;;  %1812 = vpow2.f32 %v1128_v25  ;;  %v939_v13 = vmin.f32 %v3012_v52, 0.0 }
 0x194   :  { %v1803_v36 = vpop.eup %1802  ;;  %v3021_v62 = vadd.f32 %v2007_v39, %v619_v12  ;;  %v1332_v26 = vsel %vm832_vm7, %v2936_v8, %v1593_v9  ;;  %1814 = vpow2.f32 %v1130_v42  ;;  %vm834_vm10 = vcmp.gt.f32.partialorder %v2957_v33, 0.0 }
 0x195   :  { %v1805_v19 = vpop.eup %1804  ;;  %v1592_v50 = vadd.f32 -1.0, %v1803_v36  ;;  %v1134_v17 = vmul.f32 1.442695, %v940_v27  ;;  %1432 = vst [vmem:[#allocation2 + $0x2b0] sm:$0xff] %v1332_v26  ;;  %v1132_v54 = vmul.f32 1.442695, %v939_v13  ;;  %v620_v8 = vmul.f32 %v1992_v28, %v2606_v59 }
 0x196   :  { %v1807_v0 = vpop.eup %1806  ;;  %v1594_v3 = vadd.f32 -1.0, %v1805_v19  ;;  %v941_v47 = vmin.f32 %v3021_v62, 0.0  ;;  %v622_v20 = vmul.f32 %v1994_v29, %v2614_v49  ;;  %v621_v28 = vmul.f32 %v1996_v30, %v2616_v56 }
 0x197   :  { %v1331_v57 = vsel %vm831_vm8, %v2948_v37, %v1592_v50  ;;  %v1595_v46 = vadd.f32 -1.0, %v1807_v0  ;;  %1816 = vpow2.f32 %v1134_v17  ;;  %v3040_v37 = vadd.f32 %v1998_v31, %v620_v8 }
 0x198   :  { %1431 = vst [vmem:[#allocation2 + $0x2a8] sm:$0xff] %v1331_v57  ;;  %v1333_v41 = vsel %vm833_vm9, %v2951_v10, %v1594_v3  ;;  %1818 = vpow2.f32 %v1132_v54  ;;  %v1136_v11 = vmul.f32 1.442695, %v941_v47  ;;  %v1809_v22 = vpop.eup %1808  ;;  %v623_v59 = vmul.f32 %v2000_v32, %v2626_v16 }
 0x199   :  { %1433 = vst [vmem:[#allocation2 + $0x2b8] sm:$0xff] %v1333_v41  ;;  %v1334_v23 = vsel %vm834_vm10, %v2957_v33, %v1595_v46  ;;  %v1597_v10 = vadd.f32 -1.0, %v1809_v22  ;;  %v744_v5 = vadd.f32 %v2002_v34, %v622_v20  ;;  %vm836_vm11 = vcmp.gt.f32.partialorder %v2970_v45, 0.0 }
 0x19a   :  { %1434 = vst [vmem:[#allocation2 + $0x2c0] sm:$0xff] %v1334_v23  ;;  %1820 = vpow2.f32 %v1136_v11  ;;  %v1811_v38 = vpop.eup %1810  ;;  %v942_v29 = vmin.f32 %v3040_v37, 0.0  ;;  %v3050_v49 = vadd.f32 %v2004_v35, %v621_v28  ;;  %v3053_v31 = vadd.f32 %v2007_v39, %v623_v59 }
 0x19b   :  { %v1336_v30 = vsel %vm836_vm11, %v2970_v45, %v1597_v10  ;;  %v1596_v56 = vadd.f32 -1.0, %v1811_v38  ;;  %v944_v32 = vmin.f32 %v744_v5, 0.0  ;;  %vm835_vm12 = vcmp.gt.f32.partialorder %v2978_v58, 0.0 }
 0x19c   :  { %1436 = vst [vmem:[#allocation2 + $0x2d0] sm:$0xff] %v1336_v30  ;;  %v1138_v16 = vmul.f32 1.442695, %v942_v29  ;;  %v943_v34 = vmin.f32 %v3050_v49, 0.0  ;;  %v945_v35 = vmin.f32 %v3053_v31, 0.0  ;;  %vm837_vm13 = vcmp.gt.f32.partialorder %v2990_v61, 0.0 }
 0x19d   :  { %v1813_v33 = vpop.eup %1812  ;;  %v1335_v1 = vsel %vm835_vm12, %v2978_v58, %v1596_v56  ;;  %v1142_v4 = vmul.f32 1.442695, %v944_v32  ;;  %vm838_vm14 = vcmp.gt.f32.partialorder %v2993_v53, 0.0  ;;  %vm840_vm15 = vcmp.gt.f32.partialorder %v3008_v2, 0.0 }
 0x19e   :  { %v1815_v6 = vpop.eup %1814  ;;  %1435 = vst [vmem:[#allocation2 + $0x2c8] sm:$0xff] %v1335_v1  ;;  %v1598_v39 = vadd.f32 -1.0, %v1813_v33  ;;  %1822 = vpow2.f32 %v1138_v16  ;;  %v1140_v15 = vmul.f32 1.442695, %v943_v34  ;;  %v1144_v14 = vmul.f32 1.442695, %v945_v35 }
 0x19f   :  { %v1599_v45 = vadd.f32 -1.0, %v1815_v6  ;;  %1824 = vpow2.f32 %v1142_v4  ;;  %vm839_vm0 = vcmp.gt.f32.partialorder %v3012_v52, 0.0  ;;  %vm841_vm1 = vcmp.gt.f32.partialorder %v3021_v62, 0.0 }
 0x1a0   :  { %v1337_v7 = vsel %vm837_vm13, %v2990_v61, %v1598_v39  ;;  %1826 = vpow2.f32 %v1140_v15  ;;  %vm842_vm2 = vcmp.gt.f32.partialorder %v3040_v37, 0.0  ;;  %vm844_vm3 = vcmp.gt.f32.partialorder %v744_v5, 0.0 }
 0x1a1   :  { %v1817_v40 = vpop.eup %1816  ;;  %1437 = vst [vmem:[#allocation2 + $0x2d8] sm:$0xff] %v1337_v7  ;;  %v1338_v44 = vsel %vm838_vm14, %v2993_v53, %v1599_v45  ;;  %1828 = vpow2.f32 %v1144_v14  ;;  %vm843_vm4 = vcmp.gt.f32.partialorder %v3050_v49, 0.0  ;;  %vm845_vm5 = vcmp.gt.f32.partialorder %v3053_v31, 0.0 }
 0x1a2   :  { %v1819_v58 = vpop.eup %1818  ;;  %v1601_v24 = vadd.f32 -1.0, %v1817_v40  ;;  %1438 = vst [vmem:[#allocation2 + $0x2e0] sm:$0xff] %v1338_v44 }
 0x1a3   :  { %v1600_v63 = vadd.f32 -1.0, %v1819_v58 }
 0x1a4   :  { %v1821_v48 = vpop.eup %1820  ;;  %v1340_v55 = vsel %vm840_vm15, %v3008_v2, %v1601_v24 }
 0x1a5   :  { %1440 = vst [vmem:[#allocation2 + $0x2f0] sm:$0xff] %v1340_v55  ;;  %v1339_v61 = vsel %vm839_vm0, %v3012_v52, %v1600_v63  ;;  %v1602_v51 = vadd.f32 -1.0, %v1821_v48 }
 0x1a6   :  { %1439 = vst [vmem:[#allocation2 + $0x2e8] sm:$0xff] %v1339_v61 }
 0x1a7   :  { %v1341_v53 = vsel %vm841_vm1, %v3021_v62, %v1602_v51 }
 0x1a8   :  { %1441 = vst [vmem:[#allocation2 + $0x2f8] sm:$0xff] %v1341_v53  ;;  %v1823_v43 = vpop.eup %1822 }
 0x1a9   :  { %v1825_v60 = vpop.eup %1824  ;;  %v1603_v21 = vadd.f32 -1.0, %v1823_v43 }
 0x1aa   :  { %v1827_v25 = vpop.eup %1826  ;;  %v1605_v2 = vadd.f32 -1.0, %v1825_v60 }
 0x1ab   :  { %v1829_v18 = vpop.eup %1828  ;;  %v1342_v12 = vsel %vm842_vm2, %v3040_v37, %v1603_v21  ;;  %v1604_v52 = vadd.f32 -1.0, %v1827_v25 }
 0x1ac   :  { %1442 = vst [vmem:[#allocation2 + $0x300] sm:$0x3f] %v1342_v12  ;;  %v1344_v9 = vsel %vm844_vm3, %v744_v5, %v1605_v2  ;;  %v1606_v42 = vadd.f32 -1.0, %v1829_v18 }
 0x1ad   :  { %1444 = vst [vmem:[#allocation2 + $0x310] sm:$0x3f] %v1344_v9  ;;  %v1343_v27 = vsel %vm843_vm4, %v3050_v49, %v1604_v52 }
 0x1ae   :  { %1443 = vst [vmem:[#allocation2 + $0x308] sm:$0x3f] %v1343_v27  ;;  %v1345_v36 = vsel %vm845_vm5, %v3053_v31, %v1606_v42 }
 0x1af   :  { %1445 = vst [vmem:[#allocation2 + $0x318] sm:$0x3f] %v1345_v36 }
 0x1b0   :  { %1841 = shalt.err (!%p1838_p4)
}
 0x1b1   :  { %s1842_s27 = scalar_lea.hbm %s3092_s4, 12800 }
 0x1b2   :  { %p1843_p5 = scmp.ne.s32.totalorder %s3092_s4, %s1842_s27  ;;  %p1846_p6 = scmp.lt.u32.totalorder %s1842_s27, %s3092_s4 }
 0x1b4   :  { %p1848_p7 = pnand %p1846_p6, %p1843_p5 }
 0x1b6   :  { %1851 = shalt.err (!%p1848_p7)
}
 0x1b7   :  { %s1856_s6 = smov 512   ;;  %s1857_s7 = smov 32  }
 0x1b8   :  { %1457 = dma.vmem_to_hbm [thread:$0]  %s1452_s2, 12800, %s3092_s4, [#allocation3], %s1856_s6, %s1856_s6, %s1857_s7  }
 0x1b9   :  { %1852 = dma.done.wait [#allocation3], 12800  }
 0x1ba   :  { %1853 = vsyncadd [#allocation3], 4294954496 }
 0x1bb   :  { %1461 = vsyncpa [#allocation3], 1 }

</bundles_post_ra>
